<compile_context>
chip_gen: v5e
topology: v5e:2x2
jax: 0.10.0
libtpu: 0.0.40
codegen_flags: <defaults>
</compile_context>

<pallas_src>
import math

import jax
import jax.numpy as jnp
from jax.experimental import pallas as pl
from jax.experimental.pallas import tpu as pltpu


LANE = 128   # lane width
SUB = 8      # sublane width
TM = 128     # node-row tile (multiple of 8)
TK = 128     # adjacency-column / reduction tile (multiple of 128)


def _round_up(n, m):
    return ((n + m - 1) // m) * m


# ---------------------------------------------------------------------------
# kernels
# ---------------------------------------------------------------------------
def _xw_kernel(x_ref, w_ref, o_ref):
    """o = x @ w  (bf16 in, f32 MXU accumulation, bf16 out)."""
    o_ref[...] = jnp.dot(
        x_ref[...], w_ref[...], preferred_element_type=jnp.float32
    ).astype(o_ref.dtype)


def _agg_kernel(adj_ref, xw_ref, b_ref, o_ref, acc_ref):
    """o = relu(adj @ xw + b), accumulated over the k (adj-column) grid axis."""
    k = pl.program_id(1)

    @pl.when(k == 0)
    def _():
        acc_ref[...] = jnp.zeros_like(acc_ref)

    acc_ref[...] += jnp.dot(
        adj_ref[...], xw_ref[...], preferred_element_type=jnp.float32
    )

    @pl.when(k == pl.num_programs(1) - 1)
    def _():
        o_ref[...] = jnp.maximum(acc_ref[...] + b_ref[...], 0.0).astype(o_ref.dtype)


def _agg_fused_kernel(adj_ref, xw_ref, b_ref, wn_ref, o_ref, acc_ref):
    """o = relu(adj @ xw + b) @ w_next, accumulated over the k grid axis.

    Fuses the following layer's X@W into the epilogue so the intermediate node
    activation never round-trips through HBM.
    """
    k = pl.program_id(1)

    @pl.when(k == 0)
    def _():
        acc_ref[...] = jnp.zeros_like(acc_ref)

    acc_ref[...] += jnp.dot(
        adj_ref[...], xw_ref[...], preferred_element_type=jnp.float32
    )

    @pl.when(k == pl.num_programs(1) - 1)
    def _():
        h = jnp.maximum(acc_ref[...] + b_ref[...], 0.0).astype(wn_ref.dtype)
        o_ref[...] = jnp.dot(
            h, wn_ref[...], preferred_element_type=jnp.float32
        ).astype(o_ref.dtype)


def _head_kernel(pool_ref, h_ref, fw1_ref, fb1_ref, fw2_ref, fb2_ref,
                 o_ref, acc_ref):
    """pooled = pool @ h (k-accumulated); fc1 + relu + fc2 in the epilogue."""
    k = pl.program_id(0)

    @pl.when(k == 0)
    def _():
        acc_ref[...] = jnp.zeros_like(acc_ref)

    acc_ref[...] += jnp.dot(
        pool_ref[...], h_ref[...], preferred_element_type=jnp.float32
    )

    @pl.when(k == pl.num_programs(0) - 1)
    def _():
        g = acc_ref[...].astype(fw1_ref.dtype)
        g = jnp.dot(g, fw1_ref[...], preferred_element_type=jnp.float32) + fb1_ref[...]
        g = jnp.maximum(g, 0.0).astype(fw2_ref.dtype)
        o_ref[...] = (
            jnp.dot(g, fw2_ref[...], preferred_element_type=jnp.float32)
            + fb2_ref[...]
        ).astype(o_ref.dtype)


# ---------------------------------------------------------------------------
# per-layer pallas_call wrappers
# ---------------------------------------------------------------------------
def _node_matmul(x_b, w_b, *, tm):
    """Row-tiled X @ W (first-layer feature transform)."""
    n_pad, cin = x_b.shape
    cout = w_b.shape[1]
    return pl.pallas_call(
        _xw_kernel,
        out_shape=jax.ShapeDtypeStruct((n_pad, cout), jnp.bfloat16),
        grid=(n_pad // tm,),
        in_specs=[
            pl.BlockSpec((tm, cin), lambda i: (i, 0)),
            pl.BlockSpec((cin, cout), lambda i: (0, 0)),
        ],
        out_specs=pl.BlockSpec((tm, cout), lambda i: (i, 0)),
        compiler_params=pltpu.CompilerParams(dimension_semantics=("parallel",)),
        cost_estimate=pl.CostEstimate(
            flops=2 * n_pad * cin * cout,
            transcendentals=0,
            bytes_accessed=(n_pad * cin + cin * cout + n_pad * cout) * 2,
        ),
    )(x_b, w_b)


def _gcn_agg(adj_b, xw_b, bias, w_next, *, tm, tk):
    """relu(A_hat @ xw + b) [optionally @ w_next fused in the epilogue]."""
    n_pad = adj_b.shape[0]
    cin = xw_b.shape[1]

    if w_next is None:
        cout = cin
        kernel = _agg_kernel
        extra_in, extra_specs = [], []
        epi_flops, epi_bytes = 0, 0
    else:
        cout = w_next.shape[1]
        kernel = _agg_fused_kernel
        extra_in = [w_next]
        extra_specs = [pl.BlockSpec((cin, cout), lambda i, k: (0, 0))]
        epi_flops = 2 * n_pad * cin * cout
        epi_bytes = cin * cout * 2

    flops = 2 * n_pad * n_pad * cin + epi_flops
    bytes_accessed = (
        n_pad * n_pad * 2 + n_pad * cin * 2 + n_pad * cout * 2 + cin * 4 + epi_bytes
    )

    return pl.pallas_call(
        kernel,
        out_shape=jax.ShapeDtypeStruct((n_pad, cout), jnp.bfloat16),
        grid=(n_pad // tm, n_pad // tk),
        in_specs=[
            pl.BlockSpec((tm, tk), lambda i, k: (i, k)),
            pl.BlockSpec((tk, cin), lambda i, k: (k, 0)),
            pl.BlockSpec((1, cin), lambda i, k: (0, 0)),
            *extra_specs,
        ],
        out_specs=pl.BlockSpec((tm, cout), lambda i, k: (i, 0)),
        scratch_shapes=[pltpu.VMEM((tm, cin), jnp.float32)],
        compiler_params=pltpu.CompilerParams(
            dimension_semantics=("parallel", "arbitrary")
        ),
        cost_estimate=pl.CostEstimate(
            flops=flops, transcendentals=0, bytes_accessed=bytes_accessed
        ),
    )(adj_b, xw_b, bias, *extra_in)


def _gnn_head(pool_b, h_b, fw1_b, fb1, fw2_b, fb2_p, *, tk):
    g_pad, n_pad = pool_b.shape
    c_mid = fw1_b.shape[0]      # 64
    c_hidden = fw1_b.shape[1]   # 32
    c_out = fw2_b.shape[1]      # padded to 128

    flops = (2 * g_pad * n_pad * c_mid + 2 * g_pad * c_mid * c_hidden
             + 2 * g_pad * c_hidden * c_out)
    bytes_accessed = (g_pad * n_pad * 2 + n_pad * c_mid * 2
                      + c_mid * c_hidden * 2 + c_hidden * c_out * 2
                      + g_pad * c_out * 4)

    return pl.pallas_call(
        _head_kernel,
        out_shape=jax.ShapeDtypeStruct((g_pad, c_out), jnp.float32),
        grid=(n_pad // tk,),
        in_specs=[
            pl.BlockSpec((g_pad, tk), lambda k: (0, k)),
            pl.BlockSpec((tk, c_mid), lambda k: (k, 0)),
            pl.BlockSpec((c_mid, c_hidden), lambda k: (0, 0)),
            pl.BlockSpec((1, c_hidden), lambda k: (0, 0)),
            pl.BlockSpec((c_hidden, c_out), lambda k: (0, 0)),
            pl.BlockSpec((1, c_out), lambda k: (0, 0)),
        ],
        out_specs=pl.BlockSpec((g_pad, c_out), lambda k: (0, 0)),
        scratch_shapes=[pltpu.VMEM((g_pad, c_mid), jnp.float32)],
        compiler_params=pltpu.CompilerParams(dimension_semantics=("arbitrary",)),
        cost_estimate=pl.CostEstimate(
            flops=flops, transcendentals=0, bytes_accessed=bytes_accessed
        ),
    )(pool_b, h_b, fw1_b, fb1, fw2_b, fb2_p)


def gnn_forward(adj, x, params, pool, *, tm=TM, tk=TK):
    """3x GCNConv(+ReLU) -> global_mean_pool -> Linear(+ReLU) -> Linear."""
    (w1, b1, w2, b2, w3, b3, fw1, fb1, fw2, fb2) = params
    n = adj.shape[0]
    g = pool.shape[0]
    out_channels = fw2.shape[1]
    bf16 = jnp.bfloat16

    tile = tm * tk // math.gcd(tm, tk)
    n_pad = _round_up(max(n, 1), tile)
    g_pad = _round_up(max(g, 1), SUB)
    cin_pad = _round_up(x.shape[1], LANE)
    cout_pad = _round_up(out_channels, LANE)

    # host-side padding + bf16 casts (adj / activations / weights streamed in
    # bf16; all matmul accumulation stays f32; biases stay f32)
    adj_b = jnp.zeros((n_pad, n_pad), bf16).at[:n, :n].set(adj.astype(bf16))
    x_b = jnp.zeros((n_pad, cin_pad), bf16).at[:n, : x.shape[1]].set(x.astype(bf16))
    pool_b = jnp.zeros((g_pad, n_pad), bf16).at[:g, :n].set(pool.astype(bf16))

    w1_b = jnp.zeros((cin_pad, w1.shape[1]), bf16).at[: w1.shape[0]].set(w1.astype(bf16))
    w2_b = w2.astype(bf16)
    w3_b = w3.astype(bf16)
    fw1_b = fw1.astype(bf16)
    fw2_b = jnp.zeros((fw2.shape[0], cout_pad), bf16).at[:, :out_channels].set(
        fw2.astype(bf16)
    )
    fb2_p = jnp.zeros((1, cout_pad), jnp.float32).at[:, :out_channels].set(fb2)

    # layer 1 feature transform, then fused aggregation+next-layer-XW chain.
    xw1 = _node_matmul(x_b, w1_b, tm=tm)                       # x @ W1
    xw2 = _gcn_agg(adj_b, xw1, b1, w2_b, tm=tm, tk=tk)         # relu(A@xw1+b1) @ W2
    xw3 = _gcn_agg(adj_b, xw2, b2, w3_b, tm=tm, tk=tk)         # relu(A@xw2+b2) @ W3
    h3 = _gcn_agg(adj_b, xw3, b3, None, tm=tm, tk=tk)          # relu(A@xw3+b3)
    out = _gnn_head(pool_b, h3, fw1_b, fb1, fw2_b, fb2_p, tk=tk)
    return out[:g, :out_channels]


# ---------------------------------------------------------------------------
# plain-JAX glue (graph construction, params, reference)
# ---------------------------------------------------------------------------
def build_normalized_adjacency(edge_index, num_nodes):
    """A_hat = D^-1/2 (A + I) D^-1/2 with D the degree of (A + I)."""
    src, dst = edge_index
    a = jnp.zeros((num_nodes, num_nodes), jnp.float32)
    a = a.at[src, dst].add(1.0)                              # scatter-add (PyG-style)
    a = a + jnp.eye(num_nodes, dtype=jnp.float32)            # add self loops
    deg = a.sum(axis=1)
    dinv = jnp.where(deg > 0, jax.lax.rsqrt(deg), 0.0)
    return dinv[:, None] * a * dinv[None, :]


def build_mean_pool_matrix(batch, num_graphs):
    """P[g, n] = 1/|graph g| if batch[n]==g else 0."""
    onehot = (batch[None, :] == jnp.arange(num_graphs)[:, None]).astype(jnp.float32)
    counts = onehot.sum(axis=1, keepdims=True)
    return onehot / jnp.maximum(counts, 1.0)


def init_params(key, in_channels, out_channels):
    ks = jax.random.split(key, 10)

    def lin(k, fan_in, fan_out):
        scale = 1.0 / jnp.sqrt(jnp.float32(fan_in))
        return jax.random.uniform(k, (fan_in, fan_out), jnp.float32, -scale, scale)

    w1 = lin(ks[0], in_channels, 128); b1 = jnp.zeros((1, 128), jnp.float32)
    w2 = lin(ks[1], 128, 128);         b2 = jnp.zeros((1, 128), jnp.float32)
    w3 = lin(ks[2], 128, 64);          b3 = jnp.zeros((1, 64), jnp.float32)
    fw1 = lin(ks[3], 64, 32)
    fb1 = jax.random.uniform(ks[4], (1, 32), jnp.float32, -0.125, 0.125)
    fw2 = lin(ks[5], 32, out_channels)
    fb2 = jax.random.uniform(ks[6], (1, out_channels), jnp.float32,
                             -1.0 / jnp.sqrt(32.0), 1.0 / jnp.sqrt(32.0))
    return (w1, b1, w2, b2, w3, b3, fw1, fb1, fw2, fb2)


def reference_forward(adj, x, params, pool):
    """Pure-JAX reference with the same bf16 streaming / f32 accumulation."""
    (w1, b1, w2, b2, w3, b3, fw1, fb1, fw2, fb2) = params
    bf, f32 = jnp.bfloat16, jnp.float32
    adj_b = adj.astype(bf)

    xw = jnp.dot(x.astype(bf), w1.astype(bf), preferred_element_type=f32).astype(bf)
    for b, wn in ((b1, w2), (b2, w3)):
        h = jnp.maximum(
            jnp.dot(adj_b, xw, preferred_element_type=f32) + b, 0.0
        ).astype(bf)
        xw = jnp.dot(h, wn.astype(bf), preferred_element_type=f32).astype(bf)
    h = jnp.maximum(
        jnp.dot(adj_b, xw, preferred_element_type=f32) + b3, 0.0
    ).astype(bf)

    g = jnp.dot(pool.astype(bf), h, preferred_element_type=f32)
    g = jnp.maximum(
        jnp.dot(g.astype(bf), fw1.astype(bf), preferred_element_type=f32) + fb1, 0.0
    )
    return jnp.dot(g.astype(bf), fw2.astype(bf), preferred_element_type=f32) + fb2


if __name__ == "__main__":
    key = jax.random.PRNGKey(0)
    k_x, k_p = jax.random.split(key)

    num_graphs = 20          # 20 graphs of 8 nodes each -> 160 nodes
    nodes_per_graph = 8
    num_nodes = num_graphs * nodes_per_graph
    in_channels = 4
    out_channels = 3

    # node features
    x = jax.random.normal(k_x, (num_nodes, in_channels), jnp.float32)

    # deterministic edges: a ring inside each graph (both directions)
    src, dst = [], []
    for gi in range(num_graphs):
        base = gi * nodes_per_graph
        for i in range(nodes_per_graph):
            a, b = base + i, base + (i + 1) % nodes_per_graph
            src += [a, b]
            dst += [b, a]
    edge_index = (jnp.array(src, jnp.int32), jnp.array(dst, jnp.int32))

    # batch assignment
    batch = jnp.repeat(jnp.arange(num_graphs, dtype=jnp.int32), nodes_per_graph)

    # glue (plain JAX): dense normalized adjacency + mean-pool matrix + params
    adj = build_normalized_adjacency(edge_index, num_nodes)
    pool = build_mean_pool_matrix(batch, num_graphs)
    params = init_params(k_p, in_channels, out_channels)

    fwd = jax.jit(gnn_forward)
    out = fwd(adj, x, params, pool)
    out = jax.block_until_ready(out)

    ref = reference_forward(adj, x, params, pool)
    assert out.shape == (num_graphs, out_channels)
    assert jnp.allclose(out, ref, atol=2e-2, rtol=2e-2), (
        f"max abs err {jnp.max(jnp.abs(out - ref))}"
    )

    print("KERNEL_OK")
</pallas_src>

<mosaic_0001>
module attributes {stable_mosaic.version = 11 : i64} {
  func.func @_xw_kernel(%arg0: i32, %arg1: memref<128x128xbf16, #tpu.memory_space<vmem>>, %arg2: memref<128x128xbf16, #tpu.memory_space<vmem>>, %arg3: memref<128x128xbf16, #tpu.memory_space<vmem>>) attributes {dimension_semantics = [#tpu.dimension_semantics<parallel>], iteration_bounds = array<i64: 2>, scalar_prefetch = 0 : i64, scratch_operands = 0 : i64, tpu.core_type = #tpu.core_type<tc>, window_params = [{transform_indices = @transform_0, window_bounds = array<i64: 128, 128>}, {pipeline_mode = #tpu.pipeline_mode<synchronous>, transform_indices = @transform_1, window_bounds = array<i64: 128, 128>}, {transform_indices = @transform_2, window_bounds = array<i64: 128, 128>}]} {
    %c0 = arith.constant 0 : index
    %c0_0 = arith.constant 0 : index
    %0 = vector.load %arg1[%c0, %c0_0] : memref<128x128xbf16, #tpu.memory_space<vmem>>, vector<128x128xbf16>
    %c0_1 = arith.constant 0 : index
    %c0_2 = arith.constant 0 : index
    %1 = vector.load %arg2[%c0_1, %c0_2] : memref<128x128xbf16, #tpu.memory_space<vmem>>, vector<128x128xbf16>
    %cst = arith.constant dense<0.000000e+00> : vector<128x128xf32>
    %2 = tpu.matmul %0, %1, %cst {dimension_numbers = #tpu.dot_dimension_numbers<[1], [0], [0], [1], [0, 0, 1, 1], [], []>} : vector<128x128xbf16>, vector<128x128xbf16>, vector<128x128xf32> -> vector<128x128xf32>
    %3 = arith.truncf %2 : vector<128x128xf32> to vector<128x128xbf16>
    %c0_3 = arith.constant 0 : index
    %c0_4 = arith.constant 0 : index
    %4 = vector.load %arg3[%c0_3, %c0_4] : memref<128x128xbf16, #tpu.memory_space<vmem>>, vector<128x128xbf16>
    tpu.vector_store %arg3[%c0_3, %c0_4], %3 {strides = array<i32>} : memref<128x128xbf16, #tpu.memory_space<vmem>>, vector<128x128xbf16>,
    return
  }
  func.func @transform_0(%arg0: i32) -> (i32, i32) {
    %c0_i32 = arith.constant 0 : i32
    %c0_i32_0 = arith.constant 0 : i32
    return %arg0, %c0_i32 : i32, i32
  }
  func.func @transform_1(%arg0: i32) -> (i32, i32) {
    %c0_i32 = arith.constant 0 : i32
    %c0_i32_0 = arith.constant 0 : i32
    %c0_i32_1 = arith.constant 0 : i32
    return %c0_i32, %c0_i32_0 : i32, i32
  }
  func.func @transform_2(%arg0: i32) -> (i32, i32) {
    %c0_i32 = arith.constant 0 : i32
    %c0_i32_0 = arith.constant 0 : i32
    return %arg0, %c0_i32 : i32, i32
  }
}

module attributes {stable_mosaic.version = 11 : i64} {
  func.func @_agg_fused_kernel(%arg0: i32, %arg1: i32, %arg2: memref<128x128xbf16, #tpu.memory_space<vmem>>, %arg3: memref<128x128xbf16, #tpu.memory_space<vmem>>, %arg4: memref<1x128xf32, #tpu.memory_space<vmem>>, %arg5: memref<128x128xbf16, #tpu.memory_space<vmem>>, %arg6: memref<128x128xbf16, #tpu.memory_space<vmem>>, %arg7: memref<128x128xf32, #tpu.memory_space<vmem>>) attributes {dimension_semantics = [#tpu.dimension_semantics<parallel>, #tpu.dimension_semantics<arbitrary>], iteration_bounds = array<i64: 2, 2>, scalar_prefetch = 0 : i64, scratch_operands = 1 : i64, tpu.core_type = #tpu.core_type<tc>, window_params = [{transform_indices = @transform_0, window_bounds = array<i64: 128, 128>}, {transform_indices = @transform_1, window_bounds = array<i64: 128, 128>}, {pipeline_mode = #tpu.pipeline_mode<synchronous>, transform_indices = @transform_2, window_bounds = array<i64: 1, 128>}, {pipeline_mode = #tpu.pipeline_mode<synchronous>, transform_indices = @transform_3, window_bounds = array<i64: 128, 128>}, {transform_indices = @transform_4, window_bounds = array<i64: 128, 128>}]} {
    %c0_i32 = arith.constant 0 : i32
    %0 = arith.cmpi eq, %arg1, %c0_i32 : i32
    %1 = arith.extui %0 : i1 to i32
    %c0_i32_0 = arith.constant 0 : i32
    %2 = arith.cmpi ne, %1, %c0_i32_0 : i32
    scf.if %2 {
      %cst_9 = arith.constant 0.000000e+00 : f32
      %12 = vector.broadcast %cst_9 : f32 to vector<128x128xf32>
      %c0_10 = arith.constant 0 : index
      %c0_11 = arith.constant 0 : index
      %13 = vector.load %arg7[%c0_10, %c0_11] : memref<128x128xf32, #tpu.memory_space<vmem>>, vector<128x128xf32>
      tpu.vector_store %arg7[%c0_10, %c0_11], %12 {strides = array<i32>} : memref<128x128xf32, #tpu.memory_space<vmem>>, vector<128x128xf32>,
    } else {
    }
    %c0 = arith.constant 0 : index
    %c0_1 = arith.constant 0 : index
    %3 = vector.load %arg7[%c0, %c0_1] : memref<128x128xf32, #tpu.memory_space<vmem>>, vector<128x128xf32>
    %c0_2 = arith.constant 0 : index
    %c0_3 = arith.constant 0 : index
    %4 = vector.load %arg2[%c0_2, %c0_3] : memref<128x128xbf16, #tpu.memory_space<vmem>>, vector<128x128xbf16>
    %c0_4 = arith.constant 0 : index
    %c0_5 = arith.constant 0 : index
    %5 = vector.load %arg3[%c0_4, %c0_5] : memref<128x128xbf16, #tpu.memory_space<vmem>>, vector<128x128xbf16>
    %cst = arith.constant dense<0.000000e+00> : vector<128x128xf32>
    %6 = tpu.matmul %4, %5, %cst {dimension_numbers = #tpu.dot_dimension_numbers<[1], [0], [0], [1], [0, 0, 1, 1], [], []>} : vector<128x128xbf16>, vector<128x128xbf16>, vector<128x128xf32> -> vector<128x128xf32>
    %7 = arith.addf %3, %6 : vector<128x128xf32>
    %c0_6 = arith.constant 0 : index
    %c0_7 = arith.constant 0 : index
    %8 = vector.load %arg7[%c0_6, %c0_7] : memref<128x128xf32, #tpu.memory_space<vmem>>, vector<128x128xf32>
    tpu.vector_store %arg7[%c0_6, %c0_7], %7 {strides = array<i32>} : memref<128x128xf32, #tpu.memory_space<vmem>>, vector<128x128xf32>,
    %c1_i32 = arith.constant 1 : i32
    %9 = arith.cmpi eq, %arg1, %c1_i32 : i32
    %10 = arith.extui %9 : i1 to i32
    %c0_i32_8 = arith.constant 0 : i32
    %11 = arith.cmpi ne, %10, %c0_i32_8 : i32
    scf.if %11 {
      %c0_9 = arith.constant 0 : index
      %c0_10 = arith.constant 0 : index
      %12 = vector.load %arg7[%c0_9, %c0_10] : memref<128x128xf32, #tpu.memory_space<vmem>>, vector<128x128xf32>
      %c0_11 = arith.constant 0 : index
      %c0_12 = arith.constant 0 : index
      %13 = vector.load %arg4[%c0_11, %c0_12] : memref<1x128xf32, #tpu.memory_space<vmem>>, vector<1x128xf32>
      %14 = vector.broadcast %13 : vector<1x128xf32> to vector<128x128xf32>
      %15 = arith.addf %12, %14 : vector<128x128xf32>
      %cst_13 = arith.constant 0.000000e+00 : f32
      %16 = vector.broadcast %cst_13 : f32 to vector<128x128xf32>
      %17 = arith.maximumf %15, %16 : vector<128x128xf32>
      %18 = arith.truncf %17 : vector<128x128xf32> to vector<128x128xbf16>
      %c0_14 = arith.constant 0 : index
      %c0_15 = arith.constant 0 : index
      %19 = vector.load %arg5[%c0_14, %c0_15] : memref<128x128xbf16, #tpu.memory_space<vmem>>, vector<128x128xbf16>
      %cst_16 = arith.constant dense<0.000000e+00> : vector<128x128xf32>
      %20 = tpu.matmul %18, %19, %cst_16 {dimension_numbers = #tpu.dot_dimension_numbers<[1], [0], [0], [1], [0, 0, 1, 1], [], []>} : vector<128x128xbf16>, vector<128x128xbf16>, vector<128x128xf32> -> vector<128x128xf32>
      %21 = arith.truncf %20 : vector<128x128xf32> to vector<128x128xbf16>
      %c0_17 = arith.constant 0 : index
      %c0_18 = arith.constant 0 : index
      %22 = vector.load %arg6[%c0_17, %c0_18] : memref<128x128xbf16, #tpu.memory_space<vmem>>, vector<128x128xbf16>
      tpu.vector_store %arg6[%c0_17, %c0_18], %21 {strides = array<i32>} : memref<128x128xbf16, #tpu.memory_space<vmem>>, vector<128x128xbf16>,
    } else {
    }
    return
  }
  func.func @transform_0(%arg0: i32, %arg1: i32) -> (i32, i32) {
    %c0_i32 = arith.constant 0 : i32
    return %arg0, %arg1 : i32, i32
  }
  func.func @transform_1(%arg0: i32, %arg1: i32) -> (i32, i32) {
    %c0_i32 = arith.constant 0 : i32
    %c0_i32_0 = arith.constant 0 : i32
    return %arg1, %c0_i32 : i32, i32
  }
  func.func @transform_2(%arg0: i32, %arg1: i32) -> (i32, i32) {
    %c0_i32 = arith.constant 0 : i32
    %c0_i32_0 = arith.constant 0 : i32
    %c0_i32_1 = arith.constant 0 : i32
    return %c0_i32, %c0_i32_0 : i32, i32
  }
  func.func @transform_3(%arg0: i32, %arg1: i32) -> (i32, i32) {
    %c0_i32 = arith.constant 0 : i32
    %c0_i32_0 = arith.constant 0 : i32
    %c0_i32_1 = arith.constant 0 : i32
    return %c0_i32, %c0_i32_0 : i32, i32
  }
  func.func @transform_4(%arg0: i32, %arg1: i32) -> (i32, i32) {
    %c0_i32 = arith.constant 0 : i32
    %c0_i32_0 = arith.constant 0 : i32
    return %arg0, %c0_i32 : i32, i32
  }
}

module attributes {stable_mosaic.version = 11 : i64} {
  func.func @_agg_fused_kernel(%arg0: i32, %arg1: i32, %arg2: memref<128x128xbf16, #tpu.memory_space<vmem>>, %arg3: memref<128x128xbf16, #tpu.memory_space<vmem>>, %arg4: memref<1x128xf32, #tpu.memory_space<vmem>>, %arg5: memref<128x64xbf16, #tpu.memory_space<vmem>>, %arg6: memref<128x64xbf16, #tpu.memory_space<vmem>>, %arg7: memref<128x128xf32, #tpu.memory_space<vmem>>) attributes {dimension_semantics = [#tpu.dimension_semantics<parallel>, #tpu.dimension_semantics<arbitrary>], iteration_bounds = array<i64: 2, 2>, scalar_prefetch = 0 : i64, scratch_operands = 1 : i64, tpu.core_type = #tpu.core_type<tc>, window_params = [{transform_indices = @transform_0, window_bounds = array<i64: 128, 128>}, {transform_indices = @transform_1, window_bounds = array<i64: 128, 128>}, {pipeline_mode = #tpu.pipeline_mode<synchronous>, transform_indices = @transform_2, window_bounds = array<i64: 1, 128>}, {pipeline_mode = #tpu.pipeline_mode<synchronous>, transform_indices = @transform_3, window_bounds = array<i64: 128, 64>}, {transform_indices = @transform_4, window_bounds = array<i64: 128, 64>}]} {
    %c0_i32 = arith.constant 0 : i32
    %0 = arith.cmpi eq, %arg1, %c0_i32 : i32
    %1 = arith.extui %0 : i1 to i32
    %c0_i32_0 = arith.constant 0 : i32
    %2 = arith.cmpi ne, %1, %c0_i32_0 : i32
    scf.if %2 {
      %cst_9 = arith.constant 0.000000e+00 : f32
      %12 = vector.broadcast %cst_9 : f32 to vector<128x128xf32>
      %c0_10 = arith.constant 0 : index
      %c0_11 = arith.constant 0 : index
      %13 = vector.load %arg7[%c0_10, %c0_11] : memref<128x128xf32, #tpu.memory_space<vmem>>, vector<128x128xf32>
      tpu.vector_store %arg7[%c0_10, %c0_11], %12 {strides = array<i32>} : memref<128x128xf32, #tpu.memory_space<vmem>>, vector<128x128xf32>,
    } else {
    }
    %c0 = arith.constant 0 : index
    %c0_1 = arith.constant 0 : index
    %3 = vector.load %arg7[%c0, %c0_1] : memref<128x128xf32, #tpu.memory_space<vmem>>, vector<128x128xf32>
    %c0_2 = arith.constant 0 : index
    %c0_3 = arith.constant 0 : index
    %4 = vector.load %arg2[%c0_2, %c0_3] : memref<128x128xbf16, #tpu.memory_space<vmem>>, vector<128x128xbf16>
    %c0_4 = arith.constant 0 : index
    %c0_5 = arith.constant 0 : index
    %5 = vector.load %arg3[%c0_4, %c0_5] : memref<128x128xbf16, #tpu.memory_space<vmem>>, vector<128x128xbf16>
    %cst = arith.constant dense<0.000000e+00> : vector<128x128xf32>
    %6 = tpu.matmul %4, %5, %cst {dimension_numbers = #tpu.dot_dimension_numbers<[1], [0], [0], [1], [0, 0, 1, 1], [], []>} : vector<128x128xbf16>, vector<128x128xbf16>, vector<128x128xf32> -> vector<128x128xf32>
    %7 = arith.addf %3, %6 : vector<128x128xf32>
    %c0_6 = arith.constant 0 : index
    %c0_7 = arith.constant 0 : index
    %8 = vector.load %arg7[%c0_6, %c0_7] : memref<128x128xf32, #tpu.memory_space<vmem>>, vector<128x128xf32>
    tpu.vector_store %arg7[%c0_6, %c0_7], %7 {strides = array<i32>} : memref<128x128xf32, #tpu.memory_space<vmem>>, vector<128x128xf32>,
    %c1_i32 = arith.constant 1 : i32
    %9 = arith.cmpi eq, %arg1, %c1_i32 : i32
    %10 = arith.extui %9 : i1 to i32
    %c0_i32_8 = arith.constant 0 : i32
    %11 = arith.cmpi ne, %10, %c0_i32_8 : i32
    scf.if %11 {
      %c0_9 = arith.constant 0 : index
      %c0_10 = arith.constant 0 : index
      %12 = vector.load %arg7[%c0_9, %c0_10] : memref<128x128xf32, #tpu.memory_space<vmem>>, vector<128x128xf32>
      %c0_11 = arith.constant 0 : index
      %c0_12 = arith.constant 0 : index
      %13 = vector.load %arg4[%c0_11, %c0_12] : memref<1x128xf32, #tpu.memory_space<vmem>>, vector<1x128xf32>
      %14 = vector.broadcast %13 : vector<1x128xf32> to vector<128x128xf32>
      %15 = arith.addf %12, %14 : vector<128x128xf32>
      %cst_13 = arith.constant 0.000000e+00 : f32
      %16 = vector.broadcast %cst_13 : f32 to vector<128x128xf32>
      %17 = arith.maximumf %15, %16 : vector<128x128xf32>
      %18 = arith.truncf %17 : vector<128x128xf32> to vector<128x128xbf16>
      %c0_14 = arith.constant 0 : index
      %c0_15 = arith.constant 0 : index
      %19 = vector.load %arg5[%c0_14, %c0_15] : memref<128x64xbf16, #tpu.memory_space<vmem>>, vector<128x64xbf16>
      %cst_16 = arith.constant dense<0.000000e+00> : vector<128x64xf32>
      %20 = tpu.matmul %18, %19, %cst_16 {dimension_numbers = #tpu.dot_dimension_numbers<[1], [0], [0], [1], [0, 0, 1, 1], [], []>} : vector<128x128xbf16>, vector<128x64xbf16>, vector<128x64xf32> -> vector<128x64xf32>
      %21 = arith.truncf %20 : vector<128x64xf32> to vector<128x64xbf16>
      %c0_17 = arith.constant 0 : index
      %c0_18 = arith.constant 0 : index
      %22 = vector.load %arg6[%c0_17, %c0_18] : memref<128x64xbf16, #tpu.memory_space<vmem>>, vector<128x64xbf16>
      tpu.vector_store %arg6[%c0_17, %c0_18], %21 {strides = array<i32>} : memref<128x64xbf16, #tpu.memory_space<vmem>>, vector<128x64xbf16>,
    } else {
    }
    return
  }
  func.func @transform_0(%arg0: i32, %arg1: i32) -> (i32, i32) {
    %c0_i32 = arith.constant 0 : i32
    return %arg0, %arg1 : i32, i32
  }
  func.func @transform_1(%arg0: i32, %arg1: i32) -> (i32, i32) {
    %c0_i32 = arith.constant 0 : i32
    %c0_i32_0 = arith.constant 0 : i32
    return %arg1, %c0_i32 : i32, i32
  }
  func.func @transform_2(%arg0: i32, %arg1: i32) -> (i32, i32) {
    %c0_i32 = arith.constant 0 : i32
    %c0_i32_0 = arith.constant 0 : i32
    %c0_i32_1 = arith.constant 0 : i32
    return %c0_i32, %c0_i32_0 : i32, i32
  }
  func.func @transform_3(%arg0: i32, %arg1: i32) -> (i32, i32) {
    %c0_i32 = arith.constant 0 : i32
    %c0_i32_0 = arith.constant 0 : i32
    %c0_i32_1 = arith.constant 0 : i32
    return %c0_i32, %c0_i32_0 : i32, i32
  }
  func.func @transform_4(%arg0: i32, %arg1: i32) -> (i32, i32) {
    %c0_i32 = arith.constant 0 : i32
    %c0_i32_0 = arith.constant 0 : i32
    return %arg0, %c0_i32 : i32, i32
  }
}

module attributes {stable_mosaic.version = 11 : i64} {
  func.func @_agg_kernel(%arg0: i32, %arg1: i32, %arg2: memref<128x128xbf16, #tpu.memory_space<vmem>>, %arg3: memref<128x64xbf16, #tpu.memory_space<vmem>>, %arg4: memref<1x64xf32, #tpu.memory_space<vmem>>, %arg5: memref<128x64xbf16, #tpu.memory_space<vmem>>, %arg6: memref<128x64xf32, #tpu.memory_space<vmem>>) attributes {dimension_semantics = [#tpu.dimension_semantics<parallel>, #tpu.dimension_semantics<arbitrary>], iteration_bounds = array<i64: 2, 2>, scalar_prefetch = 0 : i64, scratch_operands = 1 : i64, tpu.core_type = #tpu.core_type<tc>, window_params = [{transform_indices = @transform_0, window_bounds = array<i64: 128, 128>}, {transform_indices = @transform_1, window_bounds = array<i64: 128, 64>}, {pipeline_mode = #tpu.pipeline_mode<synchronous>, transform_indices = @transform_2, window_bounds = array<i64: 1, 64>}, {transform_indices = @transform_3, window_bounds = array<i64: 128, 64>}]} {
    %c0_i32 = arith.constant 0 : i32
    %0 = arith.cmpi eq, %arg1, %c0_i32 : i32
    %1 = arith.extui %0 : i1 to i32
    %c0_i32_0 = arith.constant 0 : i32
    %2 = arith.cmpi ne, %1, %c0_i32_0 : i32
    scf.if %2 {
      %cst_9 = arith.constant 0.000000e+00 : f32
      %12 = vector.broadcast %cst_9 : f32 to vector<128x64xf32>
      %c0_10 = arith.constant 0 : index
      %c0_11 = arith.constant 0 : index
      %13 = vector.load %arg6[%c0_10, %c0_11] : memref<128x64xf32, #tpu.memory_space<vmem>>, vector<128x64xf32>
      tpu.vector_store %arg6[%c0_10, %c0_11], %12 {strides = array<i32>} : memref<128x64xf32, #tpu.memory_space<vmem>>, vector<128x64xf32>,
    } else {
    }
    %c0 = arith.constant 0 : index
    %c0_1 = arith.constant 0 : index
    %3 = vector.load %arg6[%c0, %c0_1] : memref<128x64xf32, #tpu.memory_space<vmem>>, vector<128x64xf32>
    %c0_2 = arith.constant 0 : index
    %c0_3 = arith.constant 0 : index
    %4 = vector.load %arg2[%c0_2, %c0_3] : memref<128x128xbf16, #tpu.memory_space<vmem>>, vector<128x128xbf16>
    %c0_4 = arith.constant 0 : index
    %c0_5 = arith.constant 0 : index
    %5 = vector.load %arg3[%c0_4, %c0_5] : memref<128x64xbf16, #tpu.memory_space<vmem>>, vector<128x64xbf16>
    %cst = arith.constant dense<0.000000e+00> : vector<128x64xf32>
    %6 = tpu.matmul %4, %5, %cst {dimension_numbers = #tpu.dot_dimension_numbers<[1], [0], [0], [1], [0, 0, 1, 1], [], []>} : vector<128x128xbf16>, vector<128x64xbf16>, vector<128x64xf32> -> vector<128x64xf32>
    %7 = arith.addf %3, %6 : vector<128x64xf32>
    %c0_6 = arith.constant 0 : index
    %c0_7 = arith.constant 0 : index
    %8 = vector.load %arg6[%c0_6, %c0_7] : memref<128x64xf32, #tpu.memory_space<vmem>>, vector<128x64xf32>
    tpu.vector_store %arg6[%c0_6, %c0_7], %7 {strides = array<i32>} : memref<128x64xf32, #tpu.memory_space<vmem>>, vector<128x64xf32>,
    %c1_i32 = arith.constant 1 : i32
    %9 = arith.cmpi eq, %arg1, %c1_i32 : i32
    %10 = arith.extui %9 : i1 to i32
    %c0_i32_8 = arith.constant 0 : i32
    %11 = arith.cmpi ne, %10, %c0_i32_8 : i32
    scf.if %11 {
      %c0_9 = arith.constant 0 : index
      %c0_10 = arith.constant 0 : index
      %12 = vector.load %arg6[%c0_9, %c0_10] : memref<128x64xf32, #tpu.memory_space<vmem>>, vector<128x64xf32>
      %c0_11 = arith.constant 0 : index
      %c0_12 = arith.constant 0 : index
      %13 = vector.load %arg4[%c0_11, %c0_12] : memref<1x64xf32, #tpu.memory_space<vmem>>, vector<1x64xf32>
      %14 = vector.broadcast %13 : vector<1x64xf32> to vector<128x64xf32>
      %15 = arith.addf %12, %14 : vector<128x64xf32>
      %cst_13 = arith.constant 0.000000e+00 : f32
      %16 = vector.broadcast %cst_13 : f32 to vector<128x64xf32>
      %17 = arith.maximumf %15, %16 : vector<128x64xf32>
      %18 = arith.truncf %17 : vector<128x64xf32> to vector<128x64xbf16>
      %c0_14 = arith.constant 0 : index
      %c0_15 = arith.constant 0 : index
      %19 = vector.load %arg5[%c0_14, %c0_15] : memref<128x64xbf16, #tpu.memory_space<vmem>>, vector<128x64xbf16>
      tpu.vector_store %arg5[%c0_14, %c0_15], %18 {strides = array<i32>} : memref<128x64xbf16, #tpu.memory_space<vmem>>, vector<128x64xbf16>,
    } else {
    }
    return
  }
  func.func @transform_0(%arg0: i32, %arg1: i32) -> (i32, i32) {
    %c0_i32 = arith.constant 0 : i32
    return %arg0, %arg1 : i32, i32
  }
  func.func @transform_1(%arg0: i32, %arg1: i32) -> (i32, i32) {
    %c0_i32 = arith.constant 0 : i32
    %c0_i32_0 = arith.constant 0 : i32
    return %arg1, %c0_i32 : i32, i32
  }
  func.func @transform_2(%arg0: i32, %arg1: i32) -> (i32, i32) {
    %c0_i32 = arith.constant 0 : i32
    %c0_i32_0 = arith.constant 0 : i32
    %c0_i32_1 = arith.constant 0 : i32
    return %c0_i32, %c0_i32_0 : i32, i32
  }
  func.func @transform_3(%arg0: i32, %arg1: i32) -> (i32, i32) {
    %c0_i32 = arith.constant 0 : i32
    %c0_i32_0 = arith.constant 0 : i32
    return %arg0, %c0_i32 : i32, i32
  }
}

module attributes {stable_mosaic.version = 11 : i64} {
  func.func @_head_kernel(%arg0: i32, %arg1: memref<24x128xbf16, #tpu.memory_space<vmem>>, %arg2: memref<128x64xbf16, #tpu.memory_space<vmem>>, %arg3: memref<64x32xbf16, #tpu.memory_space<vmem>>, %arg4: memref<1x32xf32, #tpu.memory_space<vmem>>, %arg5: memref<32x128xbf16, #tpu.memory_space<vmem>>, %arg6: memref<1x128xf32, #tpu.memory_space<vmem>>, %arg7: memref<24x128xf32, #tpu.memory_space<vmem>>, %arg8: memref<24x64xf32, #tpu.memory_space<vmem>>) attributes {dimension_semantics = [#tpu.dimension_semantics<arbitrary>], iteration_bounds = array<i64: 2>, scalar_prefetch = 0 : i64, scratch_operands = 1 : i64, tpu.core_type = #tpu.core_type<tc>, window_params = [{transform_indices = @transform_0, window_bounds = array<i64: 24, 128>}, {transform_indices = @transform_1, window_bounds = array<i64: 128, 64>}, {pipeline_mode = #tpu.pipeline_mode<synchronous>, transform_indices = @transform_2, window_bounds = array<i64: 64, 32>}, {pipeline_mode = #tpu.pipeline_mode<synchronous>, transform_indices = @transform_3, window_bounds = array<i64: 1, 32>}, {pipeline_mode = #tpu.pipeline_mode<synchronous>, transform_indices = @transform_4, window_bounds = array<i64: 32, 128>}, {pipeline_mode = #tpu.pipeline_mode<synchronous>, transform_indices = @transform_5, window_bounds = array<i64: 1, 128>}, {pipeline_mode = #tpu.pipeline_mode<synchronous>, transform_indices = @transform_6, window_bounds = array<i64: 24, 128>}]} {
    %c0_i32 = arith.constant 0 : i32
    %0 = arith.cmpi eq, %arg0, %c0_i32 : i32
    %1 = arith.extui %0 : i1 to i32
    %c0_i32_0 = arith.constant 0 : i32
    %2 = arith.cmpi ne, %1, %c0_i32_0 : i32
    scf.if %2 {
      %cst_9 = arith.constant 0.000000e+00 : f32
      %12 = vector.broadcast %cst_9 : f32 to vector<24x64xf32>
      %c0_10 = arith.constant 0 : index
      %c0_11 = arith.constant 0 : index
      %13 = vector.load %arg8[%c0_10, %c0_11] : memref<24x64xf32, #tpu.memory_space<vmem>>, vector<24x64xf32>
      tpu.vector_store %arg8[%c0_10, %c0_11], %12 {strides = array<i32>} : memref<24x64xf32, #tpu.memory_space<vmem>>, vector<24x64xf32>,
    } else {
    }
    %c0 = arith.constant 0 : index
    %c0_1 = arith.constant 0 : index
    %3 = vector.load %arg8[%c0, %c0_1] : memref<24x64xf32, #tpu.memory_space<vmem>>, vector<24x64xf32>
    %c0_2 = arith.constant 0 : index
    %c0_3 = arith.constant 0 : index
    %4 = vector.load %arg1[%c0_2, %c0_3] : memref<24x128xbf16, #tpu.memory_space<vmem>>, vector<24x128xbf16>
    %c0_4 = arith.constant 0 : index
    %c0_5 = arith.constant 0 : index
    %5 = vector.load %arg2[%c0_4, %c0_5] : memref<128x64xbf16, #tpu.memory_space<vmem>>, vector<128x64xbf16>
    %cst = arith.constant dense<0.000000e+00> : vector<24x64xf32>
    %6 = tpu.matmul %4, %5, %cst {dimension_numbers = #tpu.dot_dimension_numbers<[1], [0], [0], [1], [0, 0, 1, 1], [], []>} : vector<24x128xbf16>, vector<128x64xbf16>, vector<24x64xf32> -> vector<24x64xf32>
    %7 = arith.addf %3, %6 : vector<24x64xf32>
    %c0_6 = arith.constant 0 : index
    %c0_7 = arith.constant 0 : index
    %8 = vector.load %arg8[%c0_6, %c0_7] : memref<24x64xf32, #tpu.memory_space<vmem>>, vector<24x64xf32>
    tpu.vector_store %arg8[%c0_6, %c0_7], %7 {strides = array<i32>} : memref<24x64xf32, #tpu.memory_space<vmem>>, vector<24x64xf32>,
    %c1_i32 = arith.constant 1 : i32
    %9 = arith.cmpi eq, %arg0, %c1_i32 : i32
    %10 = arith.extui %9 : i1 to i32
    %c0_i32_8 = arith.constant 0 : i32
    %11 = arith.cmpi ne, %10, %c0_i32_8 : i32
    scf.if %11 {
      %c0_9 = arith.constant 0 : index
      %c0_10 = arith.constant 0 : index
      %12 = vector.load %arg8[%c0_9, %c0_10] : memref<24x64xf32, #tpu.memory_space<vmem>>, vector<24x64xf32>
      %13 = arith.truncf %12 : vector<24x64xf32> to vector<24x64xbf16>
      %c0_11 = arith.constant 0 : index
      %c0_12 = arith.constant 0 : index
      %14 = vector.load %arg3[%c0_11, %c0_12] : memref<64x32xbf16, #tpu.memory_space<vmem>>, vector<64x32xbf16>
      %cst_13 = arith.constant dense<0.000000e+00> : vector<24x32xf32>
      %15 = tpu.matmul %13, %14, %cst_13 {dimension_numbers = #tpu.dot_dimension_numbers<[1], [0], [0], [1], [0, 0, 1, 1], [], []>} : vector<24x64xbf16>, vector<64x32xbf16>, vector<24x32xf32> -> vector<24x32xf32>
      %c0_14 = arith.constant 0 : index
      %c0_15 = arith.constant 0 : index
      %16 = vector.load %arg4[%c0_14, %c0_15] : memref<1x32xf32, #tpu.memory_space<vmem>>, vector<1x32xf32>
      %17 = vector.broadcast %16 : vector<1x32xf32> to vector<24x32xf32>
      %18 = arith.addf %15, %17 : vector<24x32xf32>
      %cst_16 = arith.constant 0.000000e+00 : f32
      %19 = vector.broadcast %cst_16 : f32 to vector<24x32xf32>
      %20 = arith.maximumf %18, %19 : vector<24x32xf32>
      %21 = arith.truncf %20 : vector<24x32xf32> to vector<24x32xbf16>
      %c0_17 = arith.constant 0 : index
      %c0_18 = arith.constant 0 : index
      %22 = vector.load %arg5[%c0_17, %c0_18] : memref<32x128xbf16, #tpu.memory_space<vmem>>, vector<32x128xbf16>
      %cst_19 = arith.constant dense<0.000000e+00> : vector<24x128xf32>
      %23 = tpu.matmul %21, %22, %cst_19 {dimension_numbers = #tpu.dot_dimension_numbers<[1], [0], [0], [1], [0, 0, 1, 1], [], []>} : vector<24x32xbf16>, vector<32x128xbf16>, vector<24x128xf32> -> vector<24x128xf32>
      %c0_20 = arith.constant 0 : index
      %c0_21 = arith.constant 0 : index
      %24 = vector.load %arg6[%c0_20, %c0_21] : memref<1x128xf32, #tpu.memory_space<vmem>>, vector<1x128xf32>
      %25 = vector.broadcast %24 : vector<1x128xf32> to vector<24x128xf32>
      %26 = arith.addf %23, %25 : vector<24x128xf32>
      %c0_22 = arith.constant 0 : index
      %c0_23 = arith.constant 0 : index
      %27 = vector.load %arg7[%c0_22, %c0_23] : memref<24x128xf32, #tpu.memory_space<vmem>>, vector<24x128xf32>
      tpu.vector_store %arg7[%c0_22, %c0_23], %26 {strides = array<i32>} : memref<24x128xf32, #tpu.memory_space<vmem>>, vector<24x128xf32>,
    } else {
    }
    return
  }
  func.func @transform_0(%arg0: i32) -> (i32, i32) {
    %c0_i32 = arith.constant 0 : i32
    %c0_i32_0 = arith.constant 0 : i32
    return %c0_i32, %arg0 : i32, i32
  }
  func.func @transform_1(%arg0: i32) -> (i32, i32) {
    %c0_i32 = arith.constant 0 : i32
    %c0_i32_0 = arith.constant 0 : i32
    return %arg0, %c0_i32 : i32, i32
  }
  func.func @transform_2(%arg0: i32) -> (i32, i32) {
    %c0_i32 = arith.constant 0 : i32
    %c0_i32_0 = arith.constant 0 : i32
    %c0_i32_1 = arith.constant 0 : i32
    return %c0_i32, %c0_i32_0 : i32, i32
  }
  func.func @transform_3(%arg0: i32) -> (i32, i32) {
    %c0_i32 = arith.constant 0 : i32
    %c0_i32_0 = arith.constant 0 : i32
    %c0_i32_1 = arith.constant 0 : i32
    return %c0_i32, %c0_i32_0 : i32, i32
  }
  func.func @transform_4(%arg0: i32) -> (i32, i32) {
    %c0_i32 = arith.constant 0 : i32
    %c0_i32_0 = arith.constant 0 : i32
    %c0_i32_1 = arith.constant 0 : i32
    return %c0_i32, %c0_i32_0 : i32, i32
  }
  func.func @transform_5(%arg0: i32) -> (i32, i32) {
    %c0_i32 = arith.constant 0 : i32
    %c0_i32_0 = arith.constant 0 : i32
    %c0_i32_1 = arith.constant 0 : i32
    return %c0_i32, %c0_i32_0 : i32, i32
  }
  func.func @transform_6(%arg0: i32) -> (i32, i32) {
    %c0_i32 = arith.constant 0 : i32
    %c0_i32_0 = arith.constant 0 : i32
    %c0_i32_1 = arith.constant 0 : i32
    return %c0_i32, %c0_i32_0 : i32, i32
  }
}

</mosaic_0001>

<bundles_post_ra>
// kernel: gnn_forward.5
= control target key start
LH: loop header
LB: loop body
LE: loop exit
PB: predicated region body
PF: predicated region fallthrough
CT: control target
= control target key end

     0   :  { %s605_s9 = smov 0   ;;  %s653_s0 = inlined_call_operand.vmem [shape: bf16[256,128], index: 0, kind: input, shape index: {}]   ;;  %s654_s1 = inlined_call_operand.vmem [shape: bf16[128,128], index: 1, kind: input, shape index: {}]   ;;  %s655_s2 = inlined_call_operand.vmem [shape: bf16[256,128], index: 2, kind: output, shape index: {}]  }
   0x1 LB: > { %s412_s10 = sadd.s32 4294967295, %s588_s9   ;;  %p416_p0 = scmp.ge.s32.totalorder %s588_s9, 1  ;;  %s588_s9 = sphi %s605_s9, %s12_s9  }
   0x2   : > { %p113_p1 = scmp.lt.s32.totalorder %s588_s9, 3 }
   0x4   : > { %p114_p2 = pnand %p416_p0, %p113_p1 }
   0x5   : > { %s417_s19 = sshll.u32 (!%p114_p2), %s412_s10, 4 }
   0x6   : > { %117 = sbr.rel (%p114_p2) target bundleno = 204 (0xcc), region = 28  ;;  %p136_p3 = scmp.lt.s32.totalorder (!%p114_p2), %s417_s19, 31 }
   0xb   : > { %v502_v0 = vld [vmem:[%s654_s1 + $0x38] sm:$0xff]  ;;  %v501_v1 = vld [vmem:[%s654_s1 + $0x30] sm:$0xff]  ;;  %v500_v2 = vld [vmem:[%s654_s1 + $0x28] sm:$0xff]  ;;  %s657_s19 = smov (!%p136_p3, %s417_s19), 31 }
   0xc   : > { %275 = vmatpush.bf16.msra.mxu0 %v502_v0  ;;  %550 = vmatpush.bf16.msra.mxu1 %v502_v0  ;;  %v499_v3 = vld [vmem:[%s654_s1 + $0x20] sm:$0xff]  ;;  %v498_v4 = vld [vmem:[%s654_s1 + $0x18] sm:$0xff]  ;;  %v497_v5 = vld [vmem:[%s654_s1 + $0x10] sm:$0xff]  ;;  %s418_s26 = sshll.u32 %s657_s19, 2 }
   0xd   : > { %551 = vmatpush.bf16.msra.mxu2 %v502_v0  ;;  %552 = vmatpush.bf16.msra.mxu3 %v502_v0  ;;  %v496_v6 = vld [vmem:[%s654_s1 + $0x8] sm:$0xff]  ;;  %v495_v7 = vld [vmem:[%s654_s1] sm:$0xff]  ;;  %s139_s3 = scalar_lea.vmem %s653_s0, %s418_s26  ;;  %s145_s6 = scalar_lea.vmem %s655_s2, %s418_s26 }
   0xe   : > { %v487_v8 = vld [vmem:[%s139_s3] sm:$0xff]  ;;  %v489_v9 = vld [vmem:[%s139_s3 + $0x10] sm:$0xff]  ;;  %v488_v12 = vld [vmem:[%s139_s3 + $0x8] sm:$0xff] }
   0xf   : > { %v491_v10 = vld [vmem:[%s139_s3 + $0x20] sm:$0xff]  ;;  %v493_v11 = vld [vmem:[%s139_s3 + $0x30] sm:$0xff]  ;;  %v490_v13 = vld [vmem:[%s139_s3 + $0x18] sm:$0xff] }
  0x10   : > { %276 = vmatpush.bf16.msra.mxu0 %v501_v1  ;;  %553 = vmatpush.bf16.msra.mxu1 %v501_v1  ;;  %v492_v14 = vld [vmem:[%s139_s3 + $0x28] sm:$0xff]  ;;  %v494_v15 = vld [vmem:[%s139_s3 + $0x38] sm:$0xff] }
  0x11   : > { %554 = vmatpush.bf16.msra.mxu2 %v501_v1  ;;  %555 = vmatpush.bf16.msra.mxu3 %v501_v1 }
  0x14   : > { %277 = vmatpush.bf16.msra.mxu0 %v500_v2  ;;  %556 = vmatpush.bf16.msra.mxu1 %v500_v2 }
  0x15   : > { %557 = vmatpush.bf16.msra.mxu2 %v500_v2  ;;  %558 = vmatpush.bf16.msra.mxu3 %v500_v2 }
  0x18   : > { %278 = vmatpush.bf16.msra.mxu0 %v499_v3  ;;  %559 = vmatpush.bf16.msra.mxu1 %v499_v3 }
  0x19   : > { %560 = vmatpush.bf16.msra.mxu2 %v499_v3  ;;  %561 = vmatpush.bf16.msra.mxu3 %v499_v3 }
  0x1c   : > { %279 = vmatpush.bf16.msra.mxu0 %v498_v4  ;;  %562 = vmatpush.bf16.msra.mxu1 %v498_v4 }
  0x1d   : > { %563 = vmatpush.bf16.msra.mxu2 %v498_v4  ;;  %564 = vmatpush.bf16.msra.mxu3 %v498_v4 }
  0x20   : > { %280 = vmatpush.bf16.msra.mxu0 %v497_v5  ;;  %565 = vmatpush.bf16.msra.mxu1 %v497_v5 }
  0x21   : > { %566 = vmatpush.bf16.msra.mxu2 %v497_v5  ;;  %567 = vmatpush.bf16.msra.mxu3 %v497_v5 }
  0x24   : > { %281 = vmatpush.bf16.msra.mxu0 %v496_v6  ;;  %568 = vmatpush.bf16.msra.mxu1 %v496_v6 }
  0x25   : > { %569 = vmatpush.bf16.msra.mxu2 %v496_v6  ;;  %570 = vmatpush.bf16.msra.mxu3 %v496_v6 }
  0x28   : > { %282 = vmatpush.bf16.msra.mxu0 %v495_v7  ;;  %571 = vmatpush.bf16.msra.mxu1 %v495_v7 }
  0x29   : > { %572 = vmatpush.bf16.msra.mxu2 %v495_v7  ;;  %573 = vmatpush.bf16.msra.mxu3 %v495_v7 }
  0x2b   : > { %283 = vmatmul.bf16.vlgmr.msra.gmra.mxu0 %v487_v8  ;;  %293 = vmatmul.bf16.vlgmr.msra.gmra.mxu1 %v489_v9 }
  0x2c   : > { %303 = vmatmul.bf16.vlgmr.msra.gmra.mxu2 %v491_v10  ;;  %313 = vmatmul.bf16.vlgmr.msra.gmra.mxu3 %v493_v11 }
  0x3b   : > { %288 = vmatmul.bf16.gmra.mxu0 %v488_v12  ;;  %298 = vmatmul.bf16.gmra.mxu1 %v490_v13 }
  0x3c   : > { %308 = vmatmul.bf16.gmra.mxu2 %v492_v14  ;;  %318 = vmatmul.bf16.gmra.mxu3 %v494_v15 }
  0xa8   : > { %v284_v16 = vpop.f32.mrf.mxu0  ;;  %v294_v17 = vpop.f32.mrf.mxu1 }
  0xaf   : > { %v304_v18 = vpop.f32.mrf.mxu2  ;;  %v314_v19 = vpop.f32.mrf.mxu3 }
  0xb0   : > { %v286_v20 = vpop.f32.mrf.mxu0  ;;  %v296_v21 = vpop.f32.mrf.mxu1 }
  0xb1   : > { %v506_v22 = vpack.c.bf16 %v286_v20, %v284_v16  ;;  %v516_v23 = vpack.c.bf16 %v296_v21, %v294_v17 }
  0xb3   : > { %507 = vst [vmem:[%s145_s6] sm:$0xff] %v506_v22  }
  0xb4   : > { %544 = vst [vmem:[%s145_s6 + $0x10] sm:$0xff] %v516_v23  }
  0xb7   : > { %v306_v24 = vpop.f32.mrf.mxu2  ;;  %v316_v25 = vpop.f32.mrf.mxu3 }
  0xb8   : > { %v526_v26 = vpack.c.bf16 %v306_v24, %v304_v18  ;;  %v536_v27 = vpack.c.bf16 %v316_v25, %v314_v19  ;;  %v289_v28 = vpop.f32.mrf.mxu0  ;;  %v299_v29 = vpop.f32.mrf.mxu1 }
  0xba   : > { %546 = vst [vmem:[%s145_s6 + $0x20] sm:$0xff] %v526_v26  }
  0xbb   : > { %548 = vst [vmem:[%s145_s6 + $0x30] sm:$0xff] %v536_v27  }
  0xbf   : > { %v309_v30 = vpop.f32.mrf.mxu2  ;;  %v319_v31 = vpop.f32.mrf.mxu3 }
  0xc0   : > { %v291_v32 = vpop.f32.mrf.mxu0  ;;  %v301_v33 = vpop.f32.mrf.mxu1 }
  0xc1   : > { %v511_v34 = vpack.c.bf16 %v291_v32, %v289_v28  ;;  %v521_v35 = vpack.c.bf16 %v301_v33, %v299_v29 }
  0xc3   : > { %543 = vst [vmem:[%s145_s6 + $0x8] sm:$0xff] %v511_v34  }
  0xc4   : > { %545 = vst [vmem:[%s145_s6 + $0x18] sm:$0xff] %v521_v35  }
  0xc7   : > { %v311_v36 = vpop.f32.mrf.mxu2  ;;  %v321_v37 = vpop.f32.mrf.mxu3 }
  0xc8   : > { %v531_v38 = vpack.c.bf16 %v311_v36, %v309_v30  ;;  %v541_v39 = vpack.c.bf16 %v321_v37, %v319_v31 }
  0xca   : > { %547 = vst [vmem:[%s145_s6 + $0x28] sm:$0xff] %v531_v38  }
  0xcb   : > { %549 = vst [vmem:[%s145_s6 + $0x38] sm:$0xff] %v541_v39  }
  0xcc PF: > { %s12_s9 = sadd.s32 1, %s588_s9  }
  0xcd   : > { %p9_p4 = scmp.ge.s32.totalorder %s12_s9, 4  }
  0xcf   :  { %11 = sbr.rel (!%p9_p4) target bundleno = 1 (0x1), region = 58 }

// kernel: gnn_forward.6
= control target key start
LH: loop header
LB: loop body
LE: loop exit
PB: predicated region body
PF: predicated region fallthrough
CT: control target
= control target key end

     0   :  { %s1258_s15 = smov 0   ;;  %s1260_s16 = smov 0   ;;  %s1445_s0 = inlined_call_operand.vmem [shape: bf16[256,256], index: 0, kind: input, shape index: {}]   ;;  %s1446_s1 = inlined_call_operand.vmem [shape: bf16[256,128], index: 1, kind: input, shape index: {}]   ;;  %s1447_s2 = inlined_call_operand.vmem [shape: f32[1,128], index: 2, kind: input, shape index: {}]   ;;  %s1448_s3 = inlined_call_operand.vmem [shape: bf16[128,128], index: 3, kind: input, shape index: {}]   ;;  %s1449_s4 = inlined_call_operand.vmem [shape: bf16[256,128], index: 4, kind: output, shape index: {}]  }
   0x1   :  { %s1262_s17 = smov 0   ;;  %s1264_s18 = smov 0  }
   0x2   :  { %s1266_s19 = smov 0   ;;  %s1268_s20 = smov 0  }
   0x3   :  { %s1270_s21 = smov 0  }
   0x4 LB: > { %s23_s22 = sadd.s32 1, %s1222_s19  ;;  %s26_s23 = sadd.s32 1, %s1226_s20  ;;  %s1230_s21 = sphi %s1270_s21, %s14_s21   ;;  %s1226_s20 = sphi %s1268_s20, %s1455_s20   ;;  %s1222_s19 = sphi %s1266_s19, %s1454_s19   ;;  %s1218_s18 = sphi %s1264_s18, %s1453_s18   ;;  %s1214_s17 = sphi %s1262_s17, %s1452_s17   ;;  %s1210_s16 = sphi %s1260_s16, %s1451_s16   ;;  %s1206_s15 = sphi %s1258_s15, %s1450_s15  }
   0x5   : > { %p24_p0 = scmp.ge.s32.totalorder %s23_s22, 2  ;;  %p42_p1 = scmp.ne.s32.totalorder %s1210_s16, %s1206_s15 }
   0x6   : > { %p43_p2 = scmp.eq.s32.totalorder %s1230_s21, 0  ;;  %s35_s27 = sadd.s32 1, %s1210_s16 }
   0x7   : > { %s1457_s22 = smov (%p24_p0, %s23_s22), 0  ;;  %s1459_s23 = smov (!%p24_p0, %s26_s23), %s1226_s20 }
   0x8   : > { %p44_p3 = por %p43_p2, %p42_p1  ;;  %p28_p4 = scmp.ge.s32.totalorder %s1459_s23, 2 }
   0x9   : > { %s31_s24 = ssub.s32 %s1222_s19, %s1457_s22  ;;  %p887_p6 = scmp.ge.s32.totalorder %s1230_s21, 4 }
   0xa   : > { %s1461_s23 = smov (%p28_p4, %s1459_s23), 0 }
   0xb   : > { %s30_s25 = ssub.s32 %s1226_s20, %s1461_s23  ;;  %168 = sbr.rel (%p887_p6) target bundleno = 38 (0x26), region = 24 }
   0xc   : > { %s32_s26 = sor.u32 %s31_s24, %s30_s25 }
   0xd   : > { %p33_p5 = scmp.eq.s32.totalorder %s32_s26, 0 }
   0xf   : > { %s1309_s28 = scalar_select %p33_p5, %s1210_s16, %s35_s27  }
  0x10   : > { %171 = sbr.rel (!%p44_p3) target bundleno = 38 (0x26), region = 28  ;;  %s173_s29 = sand.u32 (%p44_p3), 1, %s1210_s16  }
  0x11   : > { %s998_s30 = sshll.u32 (%p44_p3), %s1226_s20, 5  ;;  %s888_s5 = sshll.u32 (%p44_p3), %s173_s29, 6 }
  0x12   : > { %s178_s6 = sadd.s32 (%p44_p3), %s1222_s19, %s998_s30  ;;  %s175_s11 = scalar_lea.vmem (%p44_p3), [#allocation3], %s888_s5 }
  0x13   : > { %s891_s7 = sshll.u32 (%p44_p3), %s178_s6, 2 }
  0x14   : > { %s1318_s10 = scalar_lea.vmem (%p44_p3), %s1445_s0, %s891_s7 }
  0x15   : > { %v197_v0 = vld [vmem:[%s1318_s10] sm:$0xf]  ;;  %v199_v1 = vld [vmem:[%s1318_s10 + $0x8] sm:$0xf]  ;;  %v201_v2 = vld [vmem:[%s1318_s10 + $0x10] sm:$0xf] }
  0x16   : > { %198 = vst [vmem:[%s175_s11] sm:$0xf] %v197_v0  ;;  %v203_v3 = vld [vmem:[%s1318_s10 + $0x18] sm:$0xf]  ;;  %v205_v4 = vld [vmem:[%s1318_s10 + $0x20] sm:$0xf] }
  0x17   : > { %200 = vst [vmem:[%s175_s11 + $0x4] sm:$0xf] %v199_v1  ;;  %v207_v5 = vld [vmem:[%s1318_s10 + $0x28] sm:$0xf]  ;;  %v209_v6 = vld [vmem:[%s1318_s10 + $0x30] sm:$0xf] }
  0x18   : > { %202 = vst [vmem:[%s175_s11 + $0x8] sm:$0xf] %v201_v2  ;;  %v211_v7 = vld [vmem:[%s1318_s10 + $0x38] sm:$0xf]  ;;  %v213_v8 = vld [vmem:[%s1318_s10 + $0x40] sm:$0xf] }
  0x19   : > { %204 = vst [vmem:[%s175_s11 + $0xc] sm:$0xf] %v203_v3  ;;  %v215_v9 = vld [vmem:[%s1318_s10 + $0x48] sm:$0xf]  ;;  %v217_v10 = vld [vmem:[%s1318_s10 + $0x50] sm:$0xf] }
  0x1a   : > { %206 = vst [vmem:[%s175_s11 + $0x10] sm:$0xf] %v205_v4  ;;  %v219_v11 = vld [vmem:[%s1318_s10 + $0x58] sm:$0xf]  ;;  %v221_v12 = vld [vmem:[%s1318_s10 + $0x60] sm:$0xf] }
  0x1b   : > { %208 = vst [vmem:[%s175_s11 + $0x14] sm:$0xf] %v207_v5  ;;  %v223_v13 = vld [vmem:[%s1318_s10 + $0x68] sm:$0xf]  ;;  %v225_v14 = vld [vmem:[%s1318_s10 + $0x70] sm:$0xf] }
  0x1c   : > { %210 = vst [vmem:[%s175_s11 + $0x18] sm:$0xf] %v209_v6  ;;  %v227_v15 = vld [vmem:[%s1318_s10 + $0x78] sm:$0xf] }
  0x1d   : > { %212 = vst [vmem:[%s175_s11 + $0x1c] sm:$0xf] %v211_v7 }
  0x1e   : > { %214 = vst [vmem:[%s175_s11 + $0x20] sm:$0xf] %v213_v8 }
  0x1f   : > { %216 = vst [vmem:[%s175_s11 + $0x24] sm:$0xf] %v215_v9 }
  0x20   : > { %218 = vst [vmem:[%s175_s11 + $0x28] sm:$0xf] %v217_v10 }
  0x21   : > { %220 = vst [vmem:[%s175_s11 + $0x2c] sm:$0xf] %v219_v11 }
  0x22   : > { %222 = vst [vmem:[%s175_s11 + $0x30] sm:$0xf] %v221_v12 }
  0x23   : > { %224 = vst [vmem:[%s175_s11 + $0x34] sm:$0xf] %v223_v13 }
  0x24   : > { %226 = vst [vmem:[%s175_s11 + $0x38] sm:$0xf] %v225_v14 }
  0x25   : > { %228 = vst [vmem:[%s175_s11 + $0x3c] sm:$0xf] %v227_v15 }
  0x26 PF: > { %p892_p7 = scmp.ge.s32.totalorder %s1230_s21, 1  ;;  %p292_p8 = scmp.lt.s32.totalorder %s1230_s21, 5 }
  0x28   : > { %p293_p9 = pnand %p892_p7, %p292_p8 }
  0x29   : > { %s299_s12 = sand.u32 (!%p293_p9), 1, %s1206_s15   ;;  %s894_s13 = sshll.u32 (!%p293_p9), %s1214_s17, 4 }
  0x2a   : > { %296 = sbr.rel (%p293_p9) target bundleno = 458 (0x1ca), region = 73  ;;  %s893_s14 = sshll.u32 (!%p293_p9), %s299_s12, 6 }
  0x2b   : > { %p331_p10 = scmp.lt.s32.totalorder (!%p293_p9), %s894_s13, 31  ;;  %s896_s24 = sshll.u32 (!%p293_p9), %s1218_s18, 4 }
  0x2c   : > { %p337_p11 = scmp.lt.s32.totalorder (!%p293_p9), %s896_s24, 31  ;;  %s1351_s15 = scalar_lea.vmem (!%p293_p9), [#allocation3], %s893_s14 }
  0x2d   : > { %p898_p12 = scmp.ne.s32.totalorder (!%p293_p9), %s1214_s17, 0 }
  0x2f   : > { %s1463_s13 = smov (!%p331_p10, %s894_s13), 31  ;;  %s1465_s24 = smov (!%p337_p11, %s896_s24), 31 }
  0x30   : > { %s895_s25 = sshll.u32 %s1463_s13, 2  ;;  %s897_s30 = sshll.u32 %s1465_s24, 2 }
  0x31   : > { %s1344_s29 = scalar_lea.vmem %s1446_s1, %s895_s25  ;;  %s1349_s7 = scalar_lea.vmem %s1449_s4, %s897_s30 }
  0x32   : > { %345 = sbr.rel (%p898_p12) target bundleno = 72 (0x48), region = 81 }
  0x37   : > { %v1232_v16 = vmov 0.0  }
  0x38   : > { %346 = vst [vmem:[#allocation2 + $0x30] sm:$0xff] %v1232_v16 }
  0x39   : > { %347 = vst [vmem:[#allocation2] sm:$0xff] %v1232_v16 }
  0x3a   : > { %348 = vst [vmem:[#allocation2 + $0x58] sm:$0xff] %v1232_v16 }
  0x3b   : > { %349 = vst [vmem:[#allocation2 + $0x18] sm:$0xff] %v1232_v16 }
  0x3c   : > { %350 = vst [vmem:[#allocation2 + $0x50] sm:$0xff] %v1232_v16 }
  0x3d   : > { %351 = vst [vmem:[#allocation2 + $0x68] sm:$0xff] %v1232_v16 }
  0x3e   : > { %352 = vst [vmem:[#allocation2 + $0x8] sm:$0xff] %v1232_v16 }
  0x3f   : > { %353 = vst [vmem:[#allocation2 + $0x48] sm:$0xff] %v1232_v16 }
  0x40   : > { %354 = vst [vmem:[#allocation2 + $0x40] sm:$0xff] %v1232_v16 }
  0x41   : > { %355 = vst [vmem:[#allocation2 + $0x20] sm:$0xff] %v1232_v16 }
  0x42   : > { %356 = vst [vmem:[#allocation2 + $0x10] sm:$0xff] %v1232_v16 }
  0x43   : > { %357 = vst [vmem:[#allocation2 + $0x38] sm:$0xff] %v1232_v16 }
  0x44   : > { %358 = vst [vmem:[#allocation2 + $0x60] sm:$0xff] %v1232_v16 }
  0x45   : > { %359 = vst [vmem:[#allocation2 + $0x70] sm:$0xff] %v1232_v16 }
  0x46   : > { %360 = vst [vmem:[#allocation2 + $0x78] sm:$0xff] %v1232_v16 }
  0x47   : > { %361 = vst [vmem:[#allocation2 + $0x28] sm:$0xff] %v1232_v16 }
  0x48 PF: > { %v1014_v17 = vld [vmem:[%s1344_s29 + $0x38] sm:$0xff]  ;;  %v1013_v18 = vld [vmem:[%s1344_s29 + $0x30] sm:$0xff]  ;;  %v1012_v19 = vld [vmem:[%s1344_s29 + $0x28] sm:$0xff]  ;;  %p963_p13 = scmp.ne.s32.totalorder %s1214_s17, 1 }
  0x49   : > { %506 = vmatpush.bf16.msra.mxu0 %v1014_v17  ;;  %1070 = vmatpush.bf16.msra.mxu1 %v1014_v17  ;;  %v1011_v20 = vld [vmem:[%s1344_s29 + $0x20] sm:$0xff]  ;;  %v1010_v21 = vld [vmem:[%s1344_s29 + $0x18] sm:$0xff]  ;;  %v1009_v22 = vld [vmem:[%s1344_s29 + $0x10] sm:$0xff] }
  0x4a   : > { %1071 = vmatpush.bf16.msra.mxu2 %v1014_v17  ;;  %1072 = vmatpush.bf16.msra.mxu3 %v1014_v17  ;;  %v1008_v23 = vld [vmem:[%s1344_s29 + $0x8] sm:$0xff]  ;;  %v1007_v24 = vld [vmem:[%s1344_s29] sm:$0xff]  ;;  %v1001_v26 = vld [vmem:[%s1351_s15 + $0x10] sm:$0xff] }
  0x4b   : > { %v999_v25 = vld [vmem:[%s1351_s15] sm:$0xff]  ;;  %v1005_v28 = vld [vmem:[%s1351_s15 + $0x30] sm:$0xff]  ;;  %v1000_v29 = vld [vmem:[%s1351_s15 + $0x8] sm:$0xff] }
  0x4c   : > { %v1003_v27 = vld [vmem:[%s1351_s15 + $0x20] sm:$0xff]  ;;  %v1002_v30 = vld [vmem:[%s1351_s15 + $0x18] sm:$0xff]  ;;  %v1004_v31 = vld [vmem:[%s1351_s15 + $0x28] sm:$0xff] }
  0x4d   : > { %507 = vmatpush.bf16.msra.mxu0 %v1013_v18  ;;  %1073 = vmatpush.bf16.msra.mxu1 %v1013_v18  ;;  %v1006_v32 = vld [vmem:[%s1351_s15 + $0x38] sm:$0xff]  ;;  %v362_v33 = vld [vmem:[#allocation2 + $0x30] sm:$0xff]  ;;  %v370_v39 = vld [vmem:[#allocation2 + $0x40] sm:$0xff] }
  0x4e   : > { %1074 = vmatpush.bf16.msra.mxu2 %v1013_v18  ;;  %1075 = vmatpush.bf16.msra.mxu3 %v1013_v18  ;;  %v366_v34 = vld [vmem:[#allocation2 + $0x50] sm:$0xff]  ;;  %v374_v40 = vld [vmem:[#allocation2 + $0x60] sm:$0xff]  ;;  %v367_v42 = vld [vmem:[#allocation2 + $0x68] sm:$0xff] }
  0x4f   : > { %v363_v41 = vld [vmem:[#allocation2] sm:$0xff]  ;;  %v375_v52 = vld [vmem:[#allocation2 + $0x70] sm:$0xff]  ;;  %v364_v53 = vld [vmem:[#allocation2 + $0x58] sm:$0xff] }
  0x50   : > { %v371_v51 = vld [vmem:[#allocation2 + $0x20] sm:$0xff]  ;;  %v368_v54 = vld [vmem:[#allocation2 + $0x8] sm:$0xff]  ;;  %v372_v63 = vld [vmem:[#allocation2 + $0x10] sm:$0xff] }
  0x51   : > { %508 = vmatpush.bf16.msra.mxu0 %v1012_v19  ;;  %1076 = vmatpush.bf16.msra.mxu1 %v1012_v19  ;;  %v376_v0 = vld [vmem:[#allocation2 + $0x78] sm:$0xff]  ;;  %v369_v2 = vld [vmem:[#allocation2 + $0x48] sm:$0xff] }
  0x52   : > { %1077 = vmatpush.bf16.msra.mxu2 %v1012_v19  ;;  %1078 = vmatpush.bf16.msra.mxu3 %v1012_v19  ;;  %v365_v1 = vld [vmem:[#allocation2 + $0x18] sm:$0xff]  ;;  %v377_v12 = vld [vmem:[#allocation2 + $0x28] sm:$0xff] }
  0x53   : > { %v373_v11 = vld [vmem:[#allocation2 + $0x38] sm:$0xff] }
  0x55   : > { %509 = vmatpush.bf16.msra.mxu0 %v1011_v20  ;;  %1079 = vmatpush.bf16.msra.mxu1 %v1011_v20 }
  0x56   : > { %1080 = vmatpush.bf16.msra.mxu2 %v1011_v20  ;;  %1081 = vmatpush.bf16.msra.mxu3 %v1011_v20 }
  0x59   : > { %510 = vmatpush.bf16.msra.mxu0 %v1010_v21  ;;  %1082 = vmatpush.bf16.msra.mxu1 %v1010_v21 }
  0x5a   : > { %1083 = vmatpush.bf16.msra.mxu2 %v1010_v21  ;;  %1084 = vmatpush.bf16.msra.mxu3 %v1010_v21 }
  0x5d   : > { %511 = vmatpush.bf16.msra.mxu0 %v1009_v22  ;;  %1085 = vmatpush.bf16.msra.mxu1 %v1009_v22 }
  0x5e   : > { %1086 = vmatpush.bf16.msra.mxu2 %v1009_v22  ;;  %1087 = vmatpush.bf16.msra.mxu3 %v1009_v22 }
  0x61   : > { %512 = vmatpush.bf16.msra.mxu0 %v1008_v23  ;;  %1088 = vmatpush.bf16.msra.mxu1 %v1008_v23 }
  0x62   : > { %1089 = vmatpush.bf16.msra.mxu2 %v1008_v23  ;;  %1090 = vmatpush.bf16.msra.mxu3 %v1008_v23 }
  0x65   : > { %513 = vmatpush.bf16.msra.mxu0 %v1007_v24  ;;  %1091 = vmatpush.bf16.msra.mxu1 %v1007_v24 }
  0x66   : > { %1092 = vmatpush.bf16.msra.mxu2 %v1007_v24  ;;  %1093 = vmatpush.bf16.msra.mxu3 %v1007_v24 }
  0x68   : > { %514 = vmatmul.bf16.vlgmr.msra.gmra.mxu0 %v999_v25  ;;  %524 = vmatmul.bf16.vlgmr.msra.gmra.mxu1 %v1001_v26 }
  0x69   : > { %534 = vmatmul.bf16.vlgmr.msra.gmra.mxu2 %v1003_v27  ;;  %544 = vmatmul.bf16.vlgmr.msra.gmra.mxu3 %v1005_v28 }
  0x78   : > { %519 = vmatmul.bf16.gmra.mxu0 %v1000_v29  ;;  %529 = vmatmul.bf16.gmra.mxu1 %v1002_v30 }
  0x79   : > { %539 = vmatmul.bf16.gmra.mxu2 %v1004_v31  ;;  %549 = vmatmul.bf16.gmra.mxu3 %v1006_v32 }
  0xe5   : > { %v515_v35 = vpop.f32.mrf.mxu0  ;;  %v525_v36 = vpop.f32.mrf.mxu1 }
  0xe6   : > { %v555_v37 = vadd.f32 %v515_v35, %v362_v33  ;;  %v559_v38 = vadd.f32 %v525_v36, %v366_v34 }
  0xe8   : > { %571 = vst [vmem:[#allocation2 + $0x30] sm:$0xff] %v555_v37 }
  0xe9   : > { %575 = vst [vmem:[#allocation2 + $0x50] sm:$0xff] %v559_v38 }
  0xec   : > { %v535_v43 = vpop.f32.mrf.mxu2  ;;  %v545_v44 = vpop.f32.mrf.mxu3 }
  0xed   : > { %v563_v45 = vadd.f32 %v535_v43, %v370_v39  ;;  %v567_v46 = vadd.f32 %v545_v44, %v374_v40  ;;  %v517_v47 = vpop.f32.mrf.mxu0  ;;  %v527_v48 = vpop.f32.mrf.mxu1 }
  0xee   : > { %v556_v49 = vadd.f32 %v517_v47, %v363_v41  ;;  %v560_v50 = vadd.f32 %v527_v48, %v367_v42 }
  0xef   : > { %579 = vst [vmem:[#allocation2 + $0x40] sm:$0xff] %v563_v45 }
  0xf0   : > { %583 = vst [vmem:[#allocation2 + $0x60] sm:$0xff] %v567_v46 }
  0xf1   : > { %572 = vst [vmem:[#allocation2] sm:$0xff] %v556_v49 }
  0xf2   : > { %576 = vst [vmem:[#allocation2 + $0x68] sm:$0xff] %v560_v50 }
  0xf4   : > { %v537_v55 = vpop.f32.mrf.mxu2  ;;  %v547_v56 = vpop.f32.mrf.mxu3 }
  0xf5   : > { %v564_v57 = vadd.f32 %v537_v55, %v371_v51  ;;  %v568_v58 = vadd.f32 %v547_v56, %v375_v52  ;;  %v520_v59 = vpop.f32.mrf.mxu0  ;;  %v530_v60 = vpop.f32.mrf.mxu1 }
  0xf6   : > { %v557_v61 = vadd.f32 %v520_v59, %v364_v53  ;;  %v561_v62 = vadd.f32 %v530_v60, %v368_v54 }
  0xf7   : > { %580 = vst [vmem:[#allocation2 + $0x20] sm:$0xff] %v564_v57 }
  0xf8   : > { %584 = vst [vmem:[#allocation2 + $0x70] sm:$0xff] %v568_v58 }
  0xf9   : > { %573 = vst [vmem:[#allocation2 + $0x58] sm:$0xff] %v557_v61 }
  0xfa   : > { %577 = vst [vmem:[#allocation2 + $0x8] sm:$0xff] %v561_v62 }
  0xfc   : > { %v540_v3 = vpop.f32.mrf.mxu2  ;;  %v550_v4 = vpop.f32.mrf.mxu3 }
  0xfd   : > { %v565_v5 = vadd.f32 %v540_v3, %v372_v63  ;;  %v569_v6 = vadd.f32 %v550_v4, %v376_v0  ;;  %v522_v7 = vpop.f32.mrf.mxu0  ;;  %v532_v8 = vpop.f32.mrf.mxu1 }
  0xfe   : > { %v558_v9 = vadd.f32 %v522_v7, %v365_v1  ;;  %v562_v10 = vadd.f32 %v532_v8, %v369_v2 }
  0xff   : > { %581 = vst [vmem:[#allocation2 + $0x10] sm:$0xff] %v565_v5 }
 0x100   : > { %585 = vst [vmem:[#allocation2 + $0x78] sm:$0xff] %v569_v6 }
 0x101   : > { %574 = vst [vmem:[#allocation2 + $0x18] sm:$0xff] %v558_v9 }
 0x102   : > { %578 = vst [vmem:[#allocation2 + $0x48] sm:$0xff] %v562_v10 }
 0x104   : > { %v542_v13 = vpop.f32.mrf.mxu2  ;;  %v552_v14 = vpop.f32.mrf.mxu3  ;;  %590 = sbr.rel (%p963_p13) target bundleno = 458 (0x1ca), region = 85 }
 0x105   : > { %v566_v15 = vadd.f32 %v542_v13, %v373_v11  ;;  %v570_v16 = vadd.f32 %v552_v14, %v377_v12 }
 0x107   : > { %582 = vst [vmem:[#allocation2 + $0x38] sm:$0xff] %v566_v15 }
 0x108   : > { %586 = vst [vmem:[#allocation2 + $0x28] sm:$0xff] %v570_v16 }
 0x109   : > { %v1022_v17 = vld [vmem:[%s1448_s3 + $0x38] sm:$0xff]  ;;  %v1021_v18 = vld [vmem:[%s1448_s3 + $0x30] sm:$0xff]  ;;  %v1020_v19 = vld [vmem:[%s1448_s3 + $0x28] sm:$0xff] }
 0x10a   : > { %715 = vmatpush.bf16.msra.mxu0 %v1022_v17  ;;  %1094 = vmatpush.bf16.msra.mxu1 %v1022_v17  ;;  %v1019_v20 = vld [vmem:[%s1448_s3 + $0x20] sm:$0xff]  ;;  %v1018_v21 = vld [vmem:[%s1448_s3 + $0x18] sm:$0xff]  ;;  %v1017_v23 = vld [vmem:[%s1448_s3 + $0x10] sm:$0xff] }
 0x10b   : > { %1095 = vmatpush.bf16.msra.mxu2 %v1022_v17  ;;  %1096 = vmatpush.bf16.msra.mxu3 %v1022_v17  ;;  %v1389_v22 = vld [vmem:[%s1447_s2] ss:$0 sm:$0xff]  ;;  %v591_v24 = vld [vmem:[#allocation2 + $0x30] sm:$0xff]  ;;  %v596_v27 = vld [vmem:[#allocation2 + $0x68] sm:$0xff] }
 0x10c   : > { %v592_v25 = vld [vmem:[#allocation2] sm:$0xff]  ;;  %v595_v26 = vld [vmem:[#allocation2 + $0x50] sm:$0xff]  ;;  %v611_v32 = vadd.f32 %v1389_v22, %v591_v24  ;;  %v616_v35 = vadd.f32 %v1389_v22, %v596_v27  ;;  %v1016_v37 = vld [vmem:[%s1448_s3 + $0x8] sm:$0xff] }
 0x10d   : > { %v599_v28 = vld [vmem:[#allocation2 + $0x40] sm:$0xff]  ;;  %v604_v31 = vld [vmem:[#allocation2 + $0x70] sm:$0xff]  ;;  %v612_v33 = vadd.f32 %v1389_v22, %v592_v25  ;;  %v615_v34 = vadd.f32 %v1389_v22, %v595_v26  ;;  %v593_v54 = vld [vmem:[#allocation2 + $0x58] sm:$0xff] }
 0x10e   : > { %716 = vmatpush.bf16.msra.mxu0 %v1021_v18  ;;  %1097 = vmatpush.bf16.msra.mxu1 %v1021_v18  ;;  %v600_v29 = vld [vmem:[#allocation2 + $0x20] sm:$0xff]  ;;  %v619_v36 = vadd.f32 %v1389_v22, %v599_v28  ;;  %v624_v40 = vadd.f32 %v1389_v22, %v604_v31  ;;  %v627_v41 = vmax.f32 %v611_v32, 0.0  ;;  %v632_v44 = vmax.f32 %v616_v35, 0.0  ;;  %v594_v55 = vld [vmem:[#allocation2 + $0x18] sm:$0xff]  ;;  %v597_v56 = vld [vmem:[#allocation2 + $0x8] sm:$0xff] }
 0x10f   : > { %1098 = vmatpush.bf16.msra.mxu2 %v1021_v18  ;;  %1099 = vmatpush.bf16.msra.mxu3 %v1021_v18  ;;  %v603_v30 = vld [vmem:[#allocation2 + $0x60] sm:$0xff]  ;;  %v620_v38 = vadd.f32 %v1389_v22, %v600_v29  ;;  %v628_v42 = vmax.f32 %v612_v33, 0.0  ;;  %v631_v43 = vmax.f32 %v615_v34, 0.0  ;;  %v598_v57 = vld [vmem:[#allocation2 + $0x48] sm:$0xff]  ;;  %v601_v58 = vld [vmem:[#allocation2 + $0x10] sm:$0xff]  ;;  %v613_v62 = vadd.f32 %v1389_v22, %v593_v54 }
 0x110   : > { %v623_v39 = vadd.f32 %v1389_v22, %v603_v30  ;;  %v1015_v45 = vld [vmem:[%s1448_s3] sm:$0xff]  ;;  %v635_v46 = vmax.f32 %v619_v36, 0.0  ;;  %v640_v49 = vmax.f32 %v624_v40, 0.0  ;;  %v602_v59 = vld [vmem:[#allocation2 + $0x38] sm:$0xff]  ;;  %v606_v61 = vld [vmem:[#allocation2 + $0x28] sm:$0xff]  ;;  %v614_v63 = vadd.f32 %v1389_v22, %v594_v55 }
 0x111   : > { %v636_v47 = vmax.f32 %v620_v38, 0.0  ;;  %v643_v50 = vpack.c.bf16 %v628_v42, %v627_v41  ;;  %v645_v51 = vpack.c.bf16 %v632_v44, %v631_v43  ;;  %v605_v60 = vld [vmem:[#allocation2 + $0x78] sm:$0xff]  ;;  %v617_v0 = vadd.f32 %v1389_v22, %v597_v56 }
 0x112   : > { %717 = vmatpush.bf16.msra.mxu0 %v1020_v19  ;;  %1100 = vmatpush.bf16.msra.mxu1 %v1020_v19  ;;  %v639_v48 = vmax.f32 %v623_v39, 0.0  ;;  %v618_v1 = vadd.f32 %v1389_v22, %v598_v57  ;;  %v621_v2 = vadd.f32 %v1389_v22, %v601_v58  ;;  %v622_v3 = vadd.f32 %v1389_v22, %v602_v59 }
 0x113   : > { %1101 = vmatpush.bf16.msra.mxu2 %v1020_v19  ;;  %1102 = vmatpush.bf16.msra.mxu3 %v1020_v19  ;;  %v647_v52 = vpack.c.bf16 %v636_v47, %v635_v46  ;;  %v625_v4 = vadd.f32 %v1389_v22, %v605_v60  ;;  %v626_v5 = vadd.f32 %v1389_v22, %v606_v61  ;;  %v629_v6 = vmax.f32 %v613_v62, 0.0 }
 0x114   : > { %v649_v53 = vpack.c.bf16 %v640_v49, %v639_v48  ;;  %v630_v7 = vmax.f32 %v614_v63, 0.0  ;;  %v633_v8 = vmax.f32 %v617_v0, 0.0  ;;  %v634_v9 = vmax.f32 %v618_v1, 0.0 }
 0x115   : > { %v637_v10 = vmax.f32 %v621_v2, 0.0  ;;  %v638_v11 = vmax.f32 %v622_v3, 0.0  ;;  %v641_v12 = vmax.f32 %v625_v4, 0.0  ;;  %v642_v13 = vmax.f32 %v626_v5, 0.0 }
 0x116   : > { %718 = vmatpush.bf16.msra.mxu0 %v1019_v20  ;;  %1103 = vmatpush.bf16.msra.mxu1 %v1019_v20  ;;  %v644_v14 = vpack.c.bf16 %v630_v7, %v629_v6  ;;  %v646_v15 = vpack.c.bf16 %v634_v9, %v633_v8 }
 0x117   : > { %1104 = vmatpush.bf16.msra.mxu2 %v1019_v20  ;;  %1105 = vmatpush.bf16.msra.mxu3 %v1019_v20  ;;  %v648_v16 = vpack.c.bf16 %v638_v11, %v637_v10  ;;  %v650_v17 = vpack.c.bf16 %v642_v13, %v641_v12 }
 0x11a   : > { %719 = vmatpush.bf16.msra.mxu0 %v1018_v21  ;;  %1106 = vmatpush.bf16.msra.mxu1 %v1018_v21 }
 0x11b   : > { %1107 = vmatpush.bf16.msra.mxu2 %v1018_v21  ;;  %1108 = vmatpush.bf16.msra.mxu3 %v1018_v21 }
 0x11e   : > { %720 = vmatpush.bf16.msra.mxu0 %v1017_v23  ;;  %1109 = vmatpush.bf16.msra.mxu1 %v1017_v23 }
 0x11f   : > { %1110 = vmatpush.bf16.msra.mxu2 %v1017_v23  ;;  %1111 = vmatpush.bf16.msra.mxu3 %v1017_v23 }
 0x122   : > { %721 = vmatpush.bf16.msra.mxu0 %v1016_v37  ;;  %1112 = vmatpush.bf16.msra.mxu1 %v1016_v37 }
 0x123   : > { %1113 = vmatpush.bf16.msra.mxu2 %v1016_v37  ;;  %1114 = vmatpush.bf16.msra.mxu3 %v1016_v37 }
 0x126   : > { %722 = vmatpush.bf16.msra.mxu0 %v1015_v45  ;;  %1115 = vmatpush.bf16.msra.mxu1 %v1015_v45 }
 0x127   : > { %1116 = vmatpush.bf16.msra.mxu2 %v1015_v45  ;;  %1117 = vmatpush.bf16.msra.mxu3 %v1015_v45 }
 0x129   : > { %723 = vmatmul.bf16.vlgmr.msra.gmra.mxu0 %v643_v50  ;;  %733 = vmatmul.bf16.vlgmr.msra.gmra.mxu1 %v645_v51 }
 0x12a   : > { %743 = vmatmul.bf16.vlgmr.msra.gmra.mxu2 %v647_v52  ;;  %753 = vmatmul.bf16.vlgmr.msra.gmra.mxu3 %v649_v53 }
 0x139   : > { %728 = vmatmul.bf16.gmra.mxu0 %v644_v14  ;;  %738 = vmatmul.bf16.gmra.mxu1 %v646_v15 }
 0x13a   : > { %748 = vmatmul.bf16.gmra.mxu2 %v648_v16  ;;  %758 = vmatmul.bf16.gmra.mxu3 %v650_v17 }
 0x1a6   : > { %v724_v18 = vpop.f32.mrf.mxu0  ;;  %v734_v19 = vpop.f32.mrf.mxu1 }
 0x1ad   : > { %v744_v20 = vpop.f32.mrf.mxu2  ;;  %v754_v21 = vpop.f32.mrf.mxu3 }
 0x1ae   : > { %v726_v22 = vpop.f32.mrf.mxu0  ;;  %v736_v23 = vpop.f32.mrf.mxu1 }
 0x1af   : > { %v1026_v24 = vpack.c.bf16 %v726_v22, %v724_v18  ;;  %v1036_v25 = vpack.c.bf16 %v736_v23, %v734_v19 }
 0x1b1   : > { %1027 = vst [vmem:[%s1349_s7] sm:$0xff] %v1026_v24  }
 0x1b2   : > { %1064 = vst [vmem:[%s1349_s7 + $0x10] sm:$0xff] %v1036_v25  }
 0x1b5   : > { %v746_v26 = vpop.f32.mrf.mxu2  ;;  %v756_v27 = vpop.f32.mrf.mxu3 }
 0x1b6   : > { %v1046_v28 = vpack.c.bf16 %v746_v26, %v744_v20  ;;  %v1056_v29 = vpack.c.bf16 %v756_v27, %v754_v21  ;;  %v729_v30 = vpop.f32.mrf.mxu0  ;;  %v739_v31 = vpop.f32.mrf.mxu1 }
 0x1b8   : > { %1066 = vst [vmem:[%s1349_s7 + $0x20] sm:$0xff] %v1046_v28  }
 0x1b9   : > { %1068 = vst [vmem:[%s1349_s7 + $0x30] sm:$0xff] %v1056_v29  }
 0x1bd   : > { %v749_v32 = vpop.f32.mrf.mxu2  ;;  %v759_v33 = vpop.f32.mrf.mxu3 }
 0x1be   : > { %v731_v34 = vpop.f32.mrf.mxu0  ;;  %v741_v35 = vpop.f32.mrf.mxu1 }
 0x1bf   : > { %v1031_v36 = vpack.c.bf16 %v731_v34, %v729_v30  ;;  %v1041_v37 = vpack.c.bf16 %v741_v35, %v739_v31 }
 0x1c1   : > { %1063 = vst [vmem:[%s1349_s7 + $0x8] sm:$0xff] %v1031_v36  }
 0x1c2   : > { %1065 = vst [vmem:[%s1349_s7 + $0x18] sm:$0xff] %v1041_v37  }
 0x1c5   : > { %v751_v38 = vpop.f32.mrf.mxu2  ;;  %v761_v39 = vpop.f32.mrf.mxu3 }
 0x1c6   : > { %v1051_v40 = vpack.c.bf16 %v751_v38, %v749_v32  ;;  %v1061_v41 = vpack.c.bf16 %v761_v39, %v759_v33 }
 0x1c8   : > { %1067 = vst [vmem:[%s1349_s7 + $0x28] sm:$0xff] %v1051_v40  }
 0x1c9   : > { %1069 = vst [vmem:[%s1349_s7 + $0x38] sm:$0xff] %v1061_v41  }
 0x1ca PF: > { %s14_s21 = sadd.s32 1, %s1230_s21   ;;  %s1450_s15 = smov %s1210_s16 }
 0x1cb   : > { %p11_p0 = scmp.ge.s32.totalorder %s14_s21, 6   ;;  %s1451_s16 = smov %s1309_s28 }
 0x1cc   : > { %s1452_s17 = smov %s1222_s19  ;;  %s1453_s18 = smov %s1226_s20 }
 0x1cd   : > { %s1454_s19 = smov %s1457_s22  ;;  %s1455_s20 = smov %s1461_s23 }
 0x1ce   :  { %13 = sbr.rel (!%p11_p0) target bundleno = 4 (0x4), region = 123 }

// kernel: gnn_forward.8
= control target key start
LH: loop header
LB: loop body
LE: loop exit
PB: predicated region body
PF: predicated region fallthrough
CT: control target
= control target key end

     0   :  { %s997_s12 = smov 0   ;;  %s999_s13 = smov 0   ;;  %s1198_s0 = inlined_call_operand.vmem [shape: bf16[256,256], index: 0, kind: input, shape index: {}]   ;;  %s1199_s1 = inlined_call_operand.vmem [shape: bf16[256,64], index: 1, kind: input, shape index: {}]   ;;  %s1200_s2 = inlined_call_operand.vmem [shape: f32[1,64], index: 2, kind: input, shape index: {}]   ;;  %s1201_s3 = inlined_call_operand.vmem [shape: bf16[256,64], index: 3, kind: output, shape index: {}]  }
   0x1   :  { %s1001_s14 = smov 0   ;;  %s1003_s15 = smov 0  }
   0x2   :  { %s1005_s16 = smov 0   ;;  %s1007_s17 = smov 0  }
   0x3   :  { %s1009_s18 = smov 0  }
   0x4 LB: > { %s22_s19 = sadd.s32 1, %s966_s16  ;;  %s25_s20 = sadd.s32 1, %s970_s17  ;;  %s974_s18 = sphi %s1009_s18, %s13_s18   ;;  %s970_s17 = sphi %s1007_s17, %s1207_s17   ;;  %s966_s16 = sphi %s1005_s16, %s1206_s16   ;;  %s962_s15 = sphi %s1003_s15, %s1205_s15   ;;  %s958_s14 = sphi %s1001_s14, %s1204_s14   ;;  %s954_s13 = sphi %s999_s13, %s1203_s13   ;;  %s950_s12 = sphi %s997_s12, %s1202_s12  }
   0x5   : > { %p23_p0 = scmp.ge.s32.totalorder %s22_s19, 2  ;;  %p41_p1 = scmp.ne.s32.totalorder %s954_s13, %s950_s12 }
   0x6   : > { %p42_p2 = scmp.eq.s32.totalorder %s974_s18, 0  ;;  %s34_s24 = sadd.s32 1, %s954_s13 }
   0x7   : > { %s1209_s19 = smov (%p23_p0, %s22_s19), 0  ;;  %s1211_s20 = smov (!%p23_p0, %s25_s20), %s970_s17 }
   0x8   : > { %p43_p3 = por %p42_p2, %p41_p1  ;;  %p27_p4 = scmp.ge.s32.totalorder %s1211_s20, 2 }
   0x9   : > { %s30_s21 = ssub.s32 %s966_s16, %s1209_s19  ;;  %p742_p6 = scmp.ge.s32.totalorder %s974_s18, 4 }
   0xa   : > { %s1213_s20 = smov (%p27_p4, %s1211_s20), 0 }
   0xb   : > { %s29_s22 = ssub.s32 %s970_s17, %s1213_s20  ;;  %143 = sbr.rel (%p742_p6) target bundleno = 38 (0x26), region = 20 }
   0xc   : > { %s31_s23 = sor.u32 %s30_s21, %s29_s22 }
   0xd   : > { %p32_p5 = scmp.eq.s32.totalorder %s31_s23, 0 }
   0xf   : > { %s1048_s25 = scalar_select %p32_p5, %s954_s13, %s34_s24  }
  0x10   : > { %146 = sbr.rel (!%p43_p3) target bundleno = 38 (0x26), region = 24  ;;  %s148_s26 = sand.u32 (%p43_p3), 1, %s954_s13  }
  0x11   : > { %s821_s27 = sshll.u32 (%p43_p3), %s970_s17, 5  ;;  %s743_s28 = sshll.u32 (%p43_p3), %s148_s26, 6 }
  0x12   : > { %s153_s29 = sadd.s32 (%p43_p3), %s966_s16, %s821_s27  ;;  %s150_s7 = scalar_lea.vmem (%p43_p3), [#allocation3], %s743_s28 }
  0x13   : > { %s746_s30 = sshll.u32 (%p43_p3), %s153_s29, 2 }
  0x14   : > { %s1057_s6 = scalar_lea.vmem (%p43_p3), %s1198_s0, %s746_s30 }
  0x15   : > { %v172_v0 = vld [vmem:[%s1057_s6] sm:$0xf]  ;;  %v174_v1 = vld [vmem:[%s1057_s6 + $0x8] sm:$0xf]  ;;  %v176_v2 = vld [vmem:[%s1057_s6 + $0x10] sm:$0xf] }
  0x16   : > { %173 = vst [vmem:[%s150_s7] sm:$0xf] %v172_v0  ;;  %v178_v3 = vld [vmem:[%s1057_s6 + $0x18] sm:$0xf]  ;;  %v180_v4 = vld [vmem:[%s1057_s6 + $0x20] sm:$0xf] }
  0x17   : > { %175 = vst [vmem:[%s150_s7 + $0x4] sm:$0xf] %v174_v1  ;;  %v182_v5 = vld [vmem:[%s1057_s6 + $0x28] sm:$0xf]  ;;  %v184_v6 = vld [vmem:[%s1057_s6 + $0x30] sm:$0xf] }
  0x18   : > { %177 = vst [vmem:[%s150_s7 + $0x8] sm:$0xf] %v176_v2  ;;  %v186_v7 = vld [vmem:[%s1057_s6 + $0x38] sm:$0xf]  ;;  %v188_v8 = vld [vmem:[%s1057_s6 + $0x40] sm:$0xf] }
  0x19   : > { %179 = vst [vmem:[%s150_s7 + $0xc] sm:$0xf] %v178_v3  ;;  %v190_v9 = vld [vmem:[%s1057_s6 + $0x48] sm:$0xf]  ;;  %v192_v10 = vld [vmem:[%s1057_s6 + $0x50] sm:$0xf] }
  0x1a   : > { %181 = vst [vmem:[%s150_s7 + $0x10] sm:$0xf] %v180_v4  ;;  %v194_v11 = vld [vmem:[%s1057_s6 + $0x58] sm:$0xf]  ;;  %v196_v12 = vld [vmem:[%s1057_s6 + $0x60] sm:$0xf] }
  0x1b   : > { %183 = vst [vmem:[%s150_s7 + $0x14] sm:$0xf] %v182_v5  ;;  %v198_v13 = vld [vmem:[%s1057_s6 + $0x68] sm:$0xf]  ;;  %v200_v14 = vld [vmem:[%s1057_s6 + $0x70] sm:$0xf] }
  0x1c   : > { %185 = vst [vmem:[%s150_s7 + $0x18] sm:$0xf] %v184_v6  ;;  %v202_v15 = vld [vmem:[%s1057_s6 + $0x78] sm:$0xf] }
  0x1d   : > { %187 = vst [vmem:[%s150_s7 + $0x1c] sm:$0xf] %v186_v7 }
  0x1e   : > { %189 = vst [vmem:[%s150_s7 + $0x20] sm:$0xf] %v188_v8 }
  0x1f   : > { %191 = vst [vmem:[%s150_s7 + $0x24] sm:$0xf] %v190_v9 }
  0x20   : > { %193 = vst [vmem:[%s150_s7 + $0x28] sm:$0xf] %v192_v10 }
  0x21   : > { %195 = vst [vmem:[%s150_s7 + $0x2c] sm:$0xf] %v194_v11 }
  0x22   : > { %197 = vst [vmem:[%s150_s7 + $0x30] sm:$0xf] %v196_v12 }
  0x23   : > { %199 = vst [vmem:[%s150_s7 + $0x34] sm:$0xf] %v198_v13 }
  0x24   : > { %201 = vst [vmem:[%s150_s7 + $0x38] sm:$0xf] %v200_v14 }
  0x25   : > { %203 = vst [vmem:[%s150_s7 + $0x3c] sm:$0xf] %v202_v15 }
  0x26 PF: > { %p747_p7 = scmp.ge.s32.totalorder %s974_s18, 1  ;;  %p267_p8 = scmp.lt.s32.totalorder %s974_s18, 5 }
  0x28   : > { %p268_p9 = pnand %p747_p7, %p267_p8 }
  0x29   : > { %s274_s8 = sand.u32 (!%p268_p9), 1, %s950_s12   ;;  %s749_s9 = sshll.u32 (!%p268_p9), %s958_s14, 4 }
  0x2a   : > { %271 = sbr.rel (%p268_p9) target bundleno = 289 (0x121), region = 69  ;;  %s748_s10 = sshll.u32 (!%p268_p9), %s274_s8, 6 }
  0x2b   : > { %p304_p10 = scmp.lt.s32.totalorder (!%p268_p9), %s749_s9, 31  ;;  %s751_s11 = sshll.u32 (!%p268_p9), %s962_s15, 4 }
  0x2c   : > { %p310_p11 = scmp.lt.s32.totalorder (!%p268_p9), %s751_s11, 31  ;;  %s1090_s12 = scalar_lea.vmem (!%p268_p9), [#allocation3], %s748_s10 }
  0x2d   : > { %p753_p12 = scmp.ne.s32.totalorder (!%p268_p9), %s958_s14, 0 }
  0x2f   : > { %s1215_s9 = smov (!%p304_p10, %s749_s9), 31  ;;  %s1217_s11 = smov (!%p310_p11, %s751_s11), 31 }
  0x30   : > { %s750_s21 = sshll.u32 %s1215_s9, 2  ;;  %s752_s26 = sshll.u32 %s1217_s11, 2 }
  0x31   : > { %s1083_s24 = scalar_lea.vmem %s1199_s1, %s750_s21  ;;  %s1088_s29 = scalar_lea.vmem %s1201_s3, %s752_s26 }
  0x32   : > { %318 = sbr.rel (%p753_p12) target bundleno = 72 (0x48), region = 77 }
  0x37   : > { %vm319_vm0 = vcmask 523264   ;;  %v976_v16 = vmov 0.0  }
  0x38   : > { %320 = vst.msk [vmem:[#allocation2] sm:$0xff] %vm319_vm0, %v976_v16 }
  0x39   : > { %321 = vst.msk [vmem:[#allocation2 + $0x8] sm:$0xff] %vm319_vm0, %v976_v16 }
  0x3a   : > { %322 = vst.msk [vmem:[#allocation2 + $0x10] sm:$0xff] %vm319_vm0, %v976_v16 }
  0x3b   : > { %323 = vst.msk [vmem:[#allocation2 + $0x18] sm:$0xff] %vm319_vm0, %v976_v16 }
  0x3c   : > { %324 = vst.msk [vmem:[#allocation2 + $0x20] sm:$0xff] %vm319_vm0, %v976_v16 }
  0x3d   : > { %325 = vst.msk [vmem:[#allocation2 + $0x28] sm:$0xff] %vm319_vm0, %v976_v16 }
  0x3e   : > { %326 = vst.msk [vmem:[#allocation2 + $0x30] sm:$0xff] %vm319_vm0, %v976_v16 }
  0x3f   : > { %327 = vst.msk [vmem:[#allocation2 + $0x38] sm:$0xff] %vm319_vm0, %v976_v16 }
  0x40   : > { %328 = vst.msk [vmem:[#allocation2 + $0x40] sm:$0xff] %vm319_vm0, %v976_v16 }
  0x41   : > { %329 = vst.msk [vmem:[#allocation2 + $0x48] sm:$0xff] %vm319_vm0, %v976_v16 }
  0x42   : > { %330 = vst.msk [vmem:[#allocation2 + $0x50] sm:$0xff] %vm319_vm0, %v976_v16 }
  0x43   : > { %331 = vst.msk [vmem:[#allocation2 + $0x58] sm:$0xff] %vm319_vm0, %v976_v16 }
  0x44   : > { %332 = vst.msk [vmem:[#allocation2 + $0x60] sm:$0xff] %vm319_vm0, %v976_v16 }
  0x45   : > { %333 = vst.msk [vmem:[#allocation2 + $0x68] sm:$0xff] %vm319_vm0, %v976_v16 }
  0x46   : > { %334 = vst.msk [vmem:[#allocation2 + $0x70] sm:$0xff] %vm319_vm0, %v976_v16 }
  0x47   : > { %335 = vst.msk [vmem:[#allocation2 + $0x78] sm:$0xff] %vm319_vm0, %v976_v16 }
  0x48 PF: > { %v837_v17 = vld [vmem:[%s1083_s24 + $0x38] sm:$0xff]  ;;  %v836_v18 = vld [vmem:[%s1083_s24 + $0x30] sm:$0xff]  ;;  %v835_v19 = vld [vmem:[%s1083_s24 + $0x28] sm:$0xff]  ;;  %vm545_vm1 = vcmask 523264   ;;  %p818_p13 = scmp.ne.s32.totalorder %s958_s14, 1 }
  0x49   : > { %480 = vmatpush.bf16.msra.mxu0 %v837_v17  ;;  %838 = vmatpush.bf16.msra.mxu1 %v837_v17  ;;  %v834_v20 = vld [vmem:[%s1083_s24 + $0x20] sm:$0xff]  ;;  %v833_v21 = vld [vmem:[%s1083_s24 + $0x18] sm:$0xff]  ;;  %v832_v22 = vld [vmem:[%s1083_s24 + $0x10] sm:$0xff] }
  0x4a   : > { %839 = vmatpush.bf16.msra.mxu2 %v837_v17  ;;  %840 = vmatpush.bf16.msra.mxu3 %v837_v17  ;;  %v831_v23 = vld [vmem:[%s1083_s24 + $0x8] sm:$0xff]  ;;  %v830_v24 = vld [vmem:[%s1083_s24] sm:$0xff]  ;;  %v824_v26 = vld [vmem:[%s1090_s12 + $0x10] sm:$0xff] }
  0x4b   : > { %v822_v25 = vld [vmem:[%s1090_s12] sm:$0xff]  ;;  %v828_v28 = vld [vmem:[%s1090_s12 + $0x30] sm:$0xff]  ;;  %v823_v29 = vld [vmem:[%s1090_s12 + $0x8] sm:$0xff] }
  0x4c   : > { %v826_v27 = vld [vmem:[%s1090_s12 + $0x20] sm:$0xff]  ;;  %v825_v30 = vld [vmem:[%s1090_s12 + $0x18] sm:$0xff]  ;;  %v827_v31 = vld [vmem:[%s1090_s12 + $0x28] sm:$0xff] }
  0x4d   : > { %481 = vmatpush.bf16.msra.mxu0 %v836_v18  ;;  %841 = vmatpush.bf16.msra.mxu1 %v836_v18  ;;  %v829_v32 = vld [vmem:[%s1090_s12 + $0x38] sm:$0xff]  ;;  %v336_v33 = vld [vmem:[#allocation2] sm:$0xff]  ;;  %v337_v41 = vld [vmem:[#allocation2 + $0x8] sm:$0xff] }
  0x4e   : > { %842 = vmatpush.bf16.msra.mxu2 %v836_v18  ;;  %843 = vmatpush.bf16.msra.mxu3 %v836_v18  ;;  %v340_v34 = vld [vmem:[#allocation2 + $0x20] sm:$0xff]  ;;  %v341_v42 = vld [vmem:[#allocation2 + $0x28] sm:$0xff]  ;;  %v338_v53 = vld [vmem:[#allocation2 + $0x10] sm:$0xff] }
  0x4f   : > { %v344_v39 = vld [vmem:[#allocation2 + $0x40] sm:$0xff]  ;;  %v345_v51 = vld [vmem:[#allocation2 + $0x48] sm:$0xff]  ;;  %v342_v54 = vld [vmem:[#allocation2 + $0x30] sm:$0xff] }
  0x50   : > { %v348_v40 = vld [vmem:[#allocation2 + $0x60] sm:$0xff]  ;;  %v349_v52 = vld [vmem:[#allocation2 + $0x68] sm:$0xff]  ;;  %v346_v63 = vld [vmem:[#allocation2 + $0x50] sm:$0xff] }
  0x51   : > { %482 = vmatpush.bf16.msra.mxu0 %v835_v19  ;;  %844 = vmatpush.bf16.msra.mxu1 %v835_v19  ;;  %v350_v0 = vld [vmem:[#allocation2 + $0x70] sm:$0xff]  ;;  %v339_v1 = vld [vmem:[#allocation2 + $0x18] sm:$0xff] }
  0x52   : > { %845 = vmatpush.bf16.msra.mxu2 %v835_v19  ;;  %846 = vmatpush.bf16.msra.mxu3 %v835_v19  ;;  %v343_v2 = vld [vmem:[#allocation2 + $0x38] sm:$0xff] }
  0x53   : > { %v347_v11 = vld [vmem:[#allocation2 + $0x58] sm:$0xff] }
  0x54   : > { %v351_v12 = vld [vmem:[#allocation2 + $0x78] sm:$0xff] }
  0x55   : > { %483 = vmatpush.bf16.msra.mxu0 %v834_v20  ;;  %847 = vmatpush.bf16.msra.mxu1 %v834_v20 }
  0x56   : > { %848 = vmatpush.bf16.msra.mxu2 %v834_v20  ;;  %849 = vmatpush.bf16.msra.mxu3 %v834_v20 }
  0x59   : > { %484 = vmatpush.bf16.msra.mxu0 %v833_v21  ;;  %850 = vmatpush.bf16.msra.mxu1 %v833_v21 }
  0x5a   : > { %851 = vmatpush.bf16.msra.mxu2 %v833_v21  ;;  %852 = vmatpush.bf16.msra.mxu3 %v833_v21 }
  0x5d   : > { %485 = vmatpush.bf16.msra.mxu0 %v832_v22  ;;  %853 = vmatpush.bf16.msra.mxu1 %v832_v22 }
  0x5e   : > { %854 = vmatpush.bf16.msra.mxu2 %v832_v22  ;;  %855 = vmatpush.bf16.msra.mxu3 %v832_v22 }
  0x61   : > { %486 = vmatpush.bf16.msra.mxu0 %v831_v23  ;;  %856 = vmatpush.bf16.msra.mxu1 %v831_v23 }
  0x62   : > { %857 = vmatpush.bf16.msra.mxu2 %v831_v23  ;;  %858 = vmatpush.bf16.msra.mxu3 %v831_v23 }
  0x65   : > { %487 = vmatpush.bf16.msra.mxu0 %v830_v24  ;;  %859 = vmatpush.bf16.msra.mxu1 %v830_v24 }
  0x66   : > { %860 = vmatpush.bf16.msra.mxu2 %v830_v24  ;;  %861 = vmatpush.bf16.msra.mxu3 %v830_v24 }
  0x68   : > { %488 = vmatmul.bf16.vlgmr.msra.gmra.mxu0 %v822_v25  ;;  %498 = vmatmul.bf16.vlgmr.msra.gmra.mxu1 %v824_v26 }
  0x69   : > { %508 = vmatmul.bf16.vlgmr.msra.gmra.mxu2 %v826_v27  ;;  %518 = vmatmul.bf16.vlgmr.msra.gmra.mxu3 %v828_v28 }
  0x78   : > { %493 = vmatmul.bf16.gmra.mxu0 %v823_v29  ;;  %503 = vmatmul.bf16.gmra.mxu1 %v825_v30 }
  0x79   : > { %513 = vmatmul.bf16.gmra.mxu2 %v827_v31  ;;  %523 = vmatmul.bf16.gmra.mxu3 %v829_v32 }
  0xe5   : > { %v489_v35 = vpop.f32.mrf.mxu0  ;;  %v499_v36 = vpop.f32.mrf.mxu1 }
  0xe6   : > { %v529_v37 = vadd.f32 %v489_v35, %v336_v33  ;;  %v533_v38 = vadd.f32 %v499_v36, %v340_v34 }
  0xe8   : > { %546 = vst.msk [vmem:[#allocation2] sm:$0xff] %vm545_vm1, %v529_v37 }
  0xe9   : > { %550 = vst.msk [vmem:[#allocation2 + $0x20] sm:$0xff] %vm545_vm1, %v533_v38 }
  0xec   : > { %v509_v43 = vpop.f32.mrf.mxu2  ;;  %v519_v44 = vpop.f32.mrf.mxu3 }
  0xed   : > { %v537_v45 = vadd.f32 %v509_v43, %v344_v39  ;;  %v541_v46 = vadd.f32 %v519_v44, %v348_v40  ;;  %v491_v47 = vpop.f32.mrf.mxu0  ;;  %v501_v48 = vpop.f32.mrf.mxu1 }
  0xee   : > { %v530_v49 = vadd.f32 %v491_v47, %v337_v41  ;;  %v534_v50 = vadd.f32 %v501_v48, %v341_v42 }
  0xef   : > { %554 = vst.msk [vmem:[#allocation2 + $0x40] sm:$0xff] %vm545_vm1, %v537_v45 }
  0xf0   : > { %558 = vst.msk [vmem:[#allocation2 + $0x60] sm:$0xff] %vm545_vm1, %v541_v46 }
  0xf1   : > { %547 = vst.msk [vmem:[#allocation2 + $0x8] sm:$0xff] %vm545_vm1, %v530_v49 }
  0xf2   : > { %551 = vst.msk [vmem:[#allocation2 + $0x28] sm:$0xff] %vm545_vm1, %v534_v50 }
  0xf4   : > { %v511_v55 = vpop.f32.mrf.mxu2  ;;  %v521_v56 = vpop.f32.mrf.mxu3 }
  0xf5   : > { %v538_v57 = vadd.f32 %v511_v55, %v345_v51  ;;  %v542_v58 = vadd.f32 %v521_v56, %v349_v52  ;;  %v494_v59 = vpop.f32.mrf.mxu0  ;;  %v504_v60 = vpop.f32.mrf.mxu1 }
  0xf6   : > { %v531_v61 = vadd.f32 %v494_v59, %v338_v53  ;;  %v535_v62 = vadd.f32 %v504_v60, %v342_v54 }
  0xf7   : > { %555 = vst.msk [vmem:[#allocation2 + $0x48] sm:$0xff] %vm545_vm1, %v538_v57 }
  0xf8   : > { %559 = vst.msk [vmem:[#allocation2 + $0x68] sm:$0xff] %vm545_vm1, %v542_v58 }
  0xf9   : > { %548 = vst.msk [vmem:[#allocation2 + $0x10] sm:$0xff] %vm545_vm1, %v531_v61 }
  0xfa   : > { %552 = vst.msk [vmem:[#allocation2 + $0x30] sm:$0xff] %vm545_vm1, %v535_v62 }
  0xfc   : > { %v514_v3 = vpop.f32.mrf.mxu2  ;;  %v524_v4 = vpop.f32.mrf.mxu3 }
  0xfd   : > { %v539_v5 = vadd.f32 %v514_v3, %v346_v63  ;;  %v543_v6 = vadd.f32 %v524_v4, %v350_v0  ;;  %v496_v7 = vpop.f32.mrf.mxu0  ;;  %v506_v8 = vpop.f32.mrf.mxu1 }
  0xfe   : > { %v532_v9 = vadd.f32 %v496_v7, %v339_v1  ;;  %v536_v10 = vadd.f32 %v506_v8, %v343_v2 }
  0xff   : > { %556 = vst.msk [vmem:[#allocation2 + $0x50] sm:$0xff] %vm545_vm1, %v539_v5 }
 0x100   : > { %560 = vst.msk [vmem:[#allocation2 + $0x70] sm:$0xff] %vm545_vm1, %v543_v6 }
 0x101   : > { %549 = vst.msk [vmem:[#allocation2 + $0x18] sm:$0xff] %vm545_vm1, %v532_v9 }
 0x102   : > { %553 = vst.msk [vmem:[#allocation2 + $0x38] sm:$0xff] %vm545_vm1, %v536_v10 }
 0x104   : > { %v516_v13 = vpop.f32.mrf.mxu2  ;;  %v526_v14 = vpop.f32.mrf.mxu3  ;;  %565 = sbr.rel (%p818_p13) target bundleno = 289 (0x121), region = 81 }
 0x105   : > { %v540_v15 = vadd.f32 %v516_v13, %v347_v11  ;;  %v544_v16 = vadd.f32 %v526_v14, %v351_v12 }
 0x107   : > { %557 = vst.msk [vmem:[#allocation2 + $0x58] sm:$0xff] %vm545_vm1, %v540_v15 }
 0x108   : > { %561 = vst.msk [vmem:[#allocation2 + $0x78] sm:$0xff] %vm545_vm1, %v544_v16 }
 0x109   : > { %v566_v17 = vld [vmem:[#allocation2] sm:$0xff]  ;;  %v567_v19 = vld [vmem:[#allocation2 + $0x8] sm:$0xff]  ;;  %v568_v20 = vld [vmem:[#allocation2 + $0x10] sm:$0xff]  ;;  %vm634_vm2 = vcmask 519168  }
 0x10a   : > { %v919_v18 = vld [vmem:[%s1200_s2] ss:$0 sm:$0xff]  ;;  %v569_v21 = vld [vmem:[#allocation2 + $0x18] sm:$0xff]  ;;  %v571_v27 = vld [vmem:[#allocation2 + $0x28] sm:$0xff] }
 0x10b   : > { %v586_v22 = vadd.f32 %v919_v18, %v566_v17  ;;  %v587_v23 = vadd.f32 %v919_v18, %v567_v19  ;;  %v588_v24 = vadd.f32 %v919_v18, %v568_v20  ;;  %v589_v25 = vadd.f32 %v919_v18, %v569_v21  ;;  %v570_v26 = vld [vmem:[#allocation2 + $0x20] sm:$0xff]  ;;  %v572_v28 = vld [vmem:[#allocation2 + $0x30] sm:$0xff]  ;;  %v573_v32 = vld [vmem:[#allocation2 + $0x38] sm:$0xff] }
 0x10c   : > { %v590_v29 = vadd.f32 %v919_v18, %v570_v26  ;;  %v591_v30 = vadd.f32 %v919_v18, %v571_v27  ;;  %v592_v31 = vadd.f32 %v919_v18, %v572_v28  ;;  %v574_v37 = vld [vmem:[#allocation2 + $0x40] sm:$0xff]  ;;  %v593_v41 = vadd.f32 %v919_v18, %v573_v32  ;;  %v575_v42 = vld [vmem:[#allocation2 + $0x48] sm:$0xff]  ;;  %v576_v43 = vld [vmem:[#allocation2 + $0x50] sm:$0xff] }
 0x10d   : > { %v602_v33 = vmax.f32 %v586_v22, 0.0  ;;  %v603_v34 = vmax.f32 %v587_v23, 0.0  ;;  %v604_v35 = vmax.f32 %v588_v24, 0.0  ;;  %v605_v36 = vmax.f32 %v589_v25, 0.0  ;;  %v578_v48 = vld [vmem:[#allocation2 + $0x60] sm:$0xff]  ;;  %v579_v49 = vld [vmem:[#allocation2 + $0x68] sm:$0xff] }
 0x10e   : > { %v606_v38 = vmax.f32 %v590_v29, 0.0  ;;  %v607_v39 = vmax.f32 %v591_v30, 0.0  ;;  %v608_v40 = vmax.f32 %v592_v31, 0.0  ;;  %v577_v44 = vld [vmem:[#allocation2 + $0x58] sm:$0xff]  ;;  %v609_v52 = vmax.f32 %v593_v41, 0.0  ;;  %v580_v53 = vld [vmem:[#allocation2 + $0x70] sm:$0xff] }
 0x10f   : > { %v618_v45 = vpack.c.bf16 %v602_v33, %v602_v33  ;;  %v619_v46 = vpack.c.bf16 %v603_v34, %v603_v34  ;;  %v620_v47 = vpack.c.bf16 %v604_v35, %v604_v35  ;;  %v621_v50 = vpack.c.bf16 %v605_v36, %v605_v36  ;;  %v581_v58 = vld [vmem:[#allocation2 + $0x78] sm:$0xff] }
 0x110   : > { %v622_v51 = vpack.c.bf16 %v606_v38, %v606_v38  ;;  %v594_v54 = vadd.f32 %v919_v18, %v574_v37  ;;  %v595_v55 = vadd.f32 %v919_v18, %v575_v42  ;;  %v596_v56 = vadd.f32 %v919_v18, %v576_v43 }
 0x111   : > { %635 = vst.msk [vmem:[%s1088_s29] sm:$0xf] %vm634_vm2, %v618_v45  ;;  %v597_v57 = vadd.f32 %v919_v18, %v577_v44  ;;  %v623_v59 = vpack.c.bf16 %v607_v39, %v607_v39  ;;  %v624_v60 = vpack.c.bf16 %v608_v40, %v608_v40  ;;  %v598_v61 = vadd.f32 %v919_v18, %v578_v48 }
 0x112   : > { %636 = vst.msk [vmem:[%s1088_s29 + $0x4] sm:$0xf] %vm634_vm2, %v619_v46  ;;  %v599_v62 = vadd.f32 %v919_v18, %v579_v49  ;;  %v610_v63 = vmax.f32 %v594_v54, 0.0  ;;  %v611_v0 = vmax.f32 %v595_v55, 0.0  ;;  %v612_v1 = vmax.f32 %v596_v56, 0.0 }
 0x113   : > { %637 = vst.msk [vmem:[%s1088_s29 + $0x8] sm:$0xf] %vm634_vm2, %v620_v47  ;;  %v600_v2 = vadd.f32 %v919_v18, %v580_v53  ;;  %v625_v3 = vpack.c.bf16 %v609_v52, %v609_v52  ;;  %v613_v4 = vmax.f32 %v597_v57, 0.0  ;;  %v601_v5 = vadd.f32 %v919_v18, %v581_v58 }
 0x114   : > { %638 = vst.msk [vmem:[%s1088_s29 + $0xc] sm:$0xf] %vm634_vm2, %v621_v50  ;;  %v626_v6 = vpack.c.bf16 %v610_v63, %v610_v63  ;;  %v614_v7 = vmax.f32 %v598_v61, 0.0  ;;  %v627_v8 = vpack.c.bf16 %v611_v0, %v611_v0  ;;  %v615_v9 = vmax.f32 %v599_v62, 0.0 }
 0x115   : > { %639 = vst.msk [vmem:[%s1088_s29 + $0x10] sm:$0xf] %vm634_vm2, %v622_v51  ;;  %v628_v10 = vpack.c.bf16 %v612_v1, %v612_v1  ;;  %v616_v11 = vmax.f32 %v600_v2, 0.0  ;;  %v629_v12 = vpack.c.bf16 %v613_v4, %v613_v4  ;;  %v617_v13 = vmax.f32 %v601_v5, 0.0 }
 0x116   : > { %640 = vst.msk [vmem:[%s1088_s29 + $0x14] sm:$0xf] %vm634_vm2, %v623_v59  ;;  %v630_v14 = vpack.c.bf16 %v614_v7, %v614_v7  ;;  %v631_v15 = vpack.c.bf16 %v615_v9, %v615_v9 }
 0x117   : > { %641 = vst.msk [vmem:[%s1088_s29 + $0x18] sm:$0xf] %vm634_vm2, %v624_v60  ;;  %v632_v16 = vpack.c.bf16 %v616_v11, %v616_v11  ;;  %v633_v17 = vpack.c.bf16 %v617_v13, %v617_v13 }
 0x118   : > { %642 = vst.msk [vmem:[%s1088_s29 + $0x1c] sm:$0xf] %vm634_vm2, %v625_v3 }
 0x119   : > { %643 = vst.msk [vmem:[%s1088_s29 + $0x20] sm:$0xf] %vm634_vm2, %v626_v6 }
 0x11a   : > { %644 = vst.msk [vmem:[%s1088_s29 + $0x24] sm:$0xf] %vm634_vm2, %v627_v8 }
 0x11b   : > { %645 = vst.msk [vmem:[%s1088_s29 + $0x28] sm:$0xf] %vm634_vm2, %v628_v10 }
 0x11c   : > { %646 = vst.msk [vmem:[%s1088_s29 + $0x2c] sm:$0xf] %vm634_vm2, %v629_v12 }
 0x11d   : > { %647 = vst.msk [vmem:[%s1088_s29 + $0x30] sm:$0xf] %vm634_vm2, %v630_v14 }
 0x11e   : > { %648 = vst.msk [vmem:[%s1088_s29 + $0x34] sm:$0xf] %vm634_vm2, %v631_v15 }
 0x11f   : > { %649 = vst.msk [vmem:[%s1088_s29 + $0x38] sm:$0xf] %vm634_vm2, %v632_v16 }
 0x120   : > { %650 = vst.msk [vmem:[%s1088_s29 + $0x3c] sm:$0xf] %vm634_vm2, %v633_v17 }
 0x121 PF: > { %s13_s18 = sadd.s32 1, %s974_s18   ;;  %s1202_s12 = smov %s954_s13 }
 0x122   : > { %p10_p0 = scmp.ge.s32.totalorder %s13_s18, 6   ;;  %s1203_s13 = smov %s1048_s25 }
 0x123   : > { %s1204_s14 = smov %s966_s16  ;;  %s1205_s15 = smov %s970_s17 }
 0x124   : > { %s1206_s16 = smov %s1209_s19  ;;  %s1207_s17 = smov %s1213_s20 }
 0x125   :  { %12 = sbr.rel (!%p10_p0) target bundleno = 4 (0x4), region = 119 }

// kernel: gnn_forward.7
= control target key start
LH: loop header
LB: loop body
LE: loop exit
PB: predicated region body
PF: predicated region fallthrough
CT: control target
= control target key end

     0   :  { %s1212_s15 = smov 0   ;;  %s1214_s16 = smov 0   ;;  %s1423_s0 = inlined_call_operand.vmem [shape: bf16[256,256], index: 0, kind: input, shape index: {}]   ;;  %s1424_s1 = inlined_call_operand.vmem [shape: bf16[256,128], index: 1, kind: input, shape index: {}]   ;;  %s1425_s2 = inlined_call_operand.vmem [shape: f32[1,128], index: 2, kind: input, shape index: {}]   ;;  %s1426_s3 = inlined_call_operand.vmem [shape: bf16[128,64], index: 3, kind: input, shape index: {}]   ;;  %s1427_s4 = inlined_call_operand.vmem [shape: bf16[256,64], index: 4, kind: output, shape index: {}]  }
   0x1   :  { %s1216_s17 = smov 0   ;;  %s1218_s18 = smov 0  }
   0x2   :  { %s1220_s19 = smov 0   ;;  %s1222_s20 = smov 0  }
   0x3   :  { %s1224_s21 = smov 0  }
   0x4 LB: > { %s23_s22 = sadd.s32 1, %s1176_s19  ;;  %s26_s23 = sadd.s32 1, %s1180_s20  ;;  %s1184_s21 = sphi %s1224_s21, %s14_s21   ;;  %s1180_s20 = sphi %s1222_s20, %s1433_s20   ;;  %s1176_s19 = sphi %s1220_s19, %s1432_s19   ;;  %s1172_s18 = sphi %s1218_s18, %s1431_s18   ;;  %s1168_s17 = sphi %s1216_s17, %s1430_s17   ;;  %s1164_s16 = sphi %s1214_s16, %s1429_s16   ;;  %s1160_s15 = sphi %s1212_s15, %s1428_s15  }
   0x5   : > { %p24_p0 = scmp.ge.s32.totalorder %s23_s22, 2  ;;  %p42_p1 = scmp.ne.s32.totalorder %s1164_s16, %s1160_s15 }
   0x6   : > { %p43_p2 = scmp.eq.s32.totalorder %s1184_s21, 0  ;;  %s35_s27 = sadd.s32 1, %s1164_s16 }
   0x7   : > { %s1435_s22 = smov (%p24_p0, %s23_s22), 0  ;;  %s1437_s23 = smov (!%p24_p0, %s26_s23), %s1180_s20 }
   0x8   : > { %p44_p3 = por %p43_p2, %p42_p1  ;;  %p28_p4 = scmp.ge.s32.totalorder %s1437_s23, 2 }
   0x9   : > { %s31_s24 = ssub.s32 %s1176_s19, %s1435_s22  ;;  %p888_p6 = scmp.ge.s32.totalorder %s1184_s21, 4 }
   0xa   : > { %s1439_s23 = smov (%p28_p4, %s1437_s23), 0 }
   0xb   : > { %s30_s25 = ssub.s32 %s1180_s20, %s1439_s23  ;;  %168 = sbr.rel (%p888_p6) target bundleno = 38 (0x26), region = 24 }
   0xc   : > { %s32_s26 = sor.u32 %s31_s24, %s30_s25 }
   0xd   : > { %p33_p5 = scmp.eq.s32.totalorder %s32_s26, 0 }
   0xf   : > { %s1263_s28 = scalar_select %p33_p5, %s1164_s16, %s35_s27  }
  0x10   : > { %171 = sbr.rel (!%p44_p3) target bundleno = 38 (0x26), region = 28  ;;  %s173_s29 = sand.u32 (%p44_p3), 1, %s1164_s16  }
  0x11   : > { %s999_s30 = sshll.u32 (%p44_p3), %s1180_s20, 5  ;;  %s889_s5 = sshll.u32 (%p44_p3), %s173_s29, 6 }
  0x12   : > { %s178_s6 = sadd.s32 (%p44_p3), %s1176_s19, %s999_s30  ;;  %s175_s11 = scalar_lea.vmem (%p44_p3), [#allocation3], %s889_s5 }
  0x13   : > { %s892_s7 = sshll.u32 (%p44_p3), %s178_s6, 2 }
  0x14   : > { %s1272_s10 = scalar_lea.vmem (%p44_p3), %s1423_s0, %s892_s7 }
  0x15   : > { %v197_v0 = vld [vmem:[%s1272_s10] sm:$0xf]  ;;  %v199_v1 = vld [vmem:[%s1272_s10 + $0x8] sm:$0xf]  ;;  %v201_v2 = vld [vmem:[%s1272_s10 + $0x10] sm:$0xf] }
  0x16   : > { %198 = vst [vmem:[%s175_s11] sm:$0xf] %v197_v0  ;;  %v203_v3 = vld [vmem:[%s1272_s10 + $0x18] sm:$0xf]  ;;  %v205_v4 = vld [vmem:[%s1272_s10 + $0x20] sm:$0xf] }
  0x17   : > { %200 = vst [vmem:[%s175_s11 + $0x4] sm:$0xf] %v199_v1  ;;  %v207_v5 = vld [vmem:[%s1272_s10 + $0x28] sm:$0xf]  ;;  %v209_v6 = vld [vmem:[%s1272_s10 + $0x30] sm:$0xf] }
  0x18   : > { %202 = vst [vmem:[%s175_s11 + $0x8] sm:$0xf] %v201_v2  ;;  %v211_v7 = vld [vmem:[%s1272_s10 + $0x38] sm:$0xf]  ;;  %v213_v8 = vld [vmem:[%s1272_s10 + $0x40] sm:$0xf] }
  0x19   : > { %204 = vst [vmem:[%s175_s11 + $0xc] sm:$0xf] %v203_v3  ;;  %v215_v9 = vld [vmem:[%s1272_s10 + $0x48] sm:$0xf]  ;;  %v217_v10 = vld [vmem:[%s1272_s10 + $0x50] sm:$0xf] }
  0x1a   : > { %206 = vst [vmem:[%s175_s11 + $0x10] sm:$0xf] %v205_v4  ;;  %v219_v11 = vld [vmem:[%s1272_s10 + $0x58] sm:$0xf]  ;;  %v221_v12 = vld [vmem:[%s1272_s10 + $0x60] sm:$0xf] }
  0x1b   : > { %208 = vst [vmem:[%s175_s11 + $0x14] sm:$0xf] %v207_v5  ;;  %v223_v13 = vld [vmem:[%s1272_s10 + $0x68] sm:$0xf]  ;;  %v225_v14 = vld [vmem:[%s1272_s10 + $0x70] sm:$0xf] }
  0x1c   : > { %210 = vst [vmem:[%s175_s11 + $0x18] sm:$0xf] %v209_v6  ;;  %v227_v15 = vld [vmem:[%s1272_s10 + $0x78] sm:$0xf] }
  0x1d   : > { %212 = vst [vmem:[%s175_s11 + $0x1c] sm:$0xf] %v211_v7 }
  0x1e   : > { %214 = vst [vmem:[%s175_s11 + $0x20] sm:$0xf] %v213_v8 }
  0x1f   : > { %216 = vst [vmem:[%s175_s11 + $0x24] sm:$0xf] %v215_v9 }
  0x20   : > { %218 = vst [vmem:[%s175_s11 + $0x28] sm:$0xf] %v217_v10 }
  0x21   : > { %220 = vst [vmem:[%s175_s11 + $0x2c] sm:$0xf] %v219_v11 }
  0x22   : > { %222 = vst [vmem:[%s175_s11 + $0x30] sm:$0xf] %v221_v12 }
  0x23   : > { %224 = vst [vmem:[%s175_s11 + $0x34] sm:$0xf] %v223_v13 }
  0x24   : > { %226 = vst [vmem:[%s175_s11 + $0x38] sm:$0xf] %v225_v14 }
  0x25   : > { %228 = vst [vmem:[%s175_s11 + $0x3c] sm:$0xf] %v227_v15 }
  0x26 PF: > { %p893_p7 = scmp.ge.s32.totalorder %s1184_s21, 1  ;;  %p292_p8 = scmp.lt.s32.totalorder %s1184_s21, 5 }
  0x28   : > { %p293_p9 = pnand %p893_p7, %p292_p8 }
  0x29   : > { %s299_s12 = sand.u32 (!%p293_p9), 1, %s1160_s15   ;;  %s895_s13 = sshll.u32 (!%p293_p9), %s1168_s17, 4 }
  0x2a   : > { %296 = sbr.rel (%p293_p9) target bundleno = 458 (0x1ca), region = 73  ;;  %s894_s14 = sshll.u32 (!%p293_p9), %s299_s12, 6 }
  0x2b   : > { %p331_p10 = scmp.lt.s32.totalorder (!%p293_p9), %s895_s13, 31  ;;  %s897_s24 = sshll.u32 (!%p293_p9), %s1172_s18, 4 }
  0x2c   : > { %p337_p11 = scmp.lt.s32.totalorder (!%p293_p9), %s897_s24, 31  ;;  %s1305_s15 = scalar_lea.vmem (!%p293_p9), [#allocation3], %s894_s14 }
  0x2d   : > { %p899_p12 = scmp.ne.s32.totalorder (!%p293_p9), %s1168_s17, 0 }
  0x2f   : > { %s1441_s13 = smov (!%p331_p10, %s895_s13), 31  ;;  %s1443_s24 = smov (!%p337_p11, %s897_s24), 31 }
  0x30   : > { %s896_s25 = sshll.u32 %s1441_s13, 2  ;;  %s898_s30 = sshll.u32 %s1443_s24, 2 }
  0x31   : > { %s1298_s29 = scalar_lea.vmem %s1424_s1, %s896_s25  ;;  %s1303_s7 = scalar_lea.vmem %s1427_s4, %s898_s30 }
  0x32   : > { %345 = sbr.rel (%p899_p12) target bundleno = 72 (0x48), region = 81 }
  0x37   : > { %v1186_v16 = vmov 0.0  }
  0x38   : > { %346 = vst [vmem:[#allocation2 + $0x30] sm:$0xff] %v1186_v16 }
  0x39   : > { %347 = vst [vmem:[#allocation2] sm:$0xff] %v1186_v16 }
  0x3a   : > { %348 = vst [vmem:[#allocation2 + $0x58] sm:$0xff] %v1186_v16 }
  0x3b   : > { %349 = vst [vmem:[#allocation2 + $0x18] sm:$0xff] %v1186_v16 }
  0x3c   : > { %350 = vst [vmem:[#allocation2 + $0x50] sm:$0xff] %v1186_v16 }
  0x3d   : > { %351 = vst [vmem:[#allocation2 + $0x68] sm:$0xff] %v1186_v16 }
  0x3e   : > { %352 = vst [vmem:[#allocation2 + $0x8] sm:$0xff] %v1186_v16 }
  0x3f   : > { %353 = vst [vmem:[#allocation2 + $0x48] sm:$0xff] %v1186_v16 }
  0x40   : > { %354 = vst [vmem:[#allocation2 + $0x40] sm:$0xff] %v1186_v16 }
  0x41   : > { %355 = vst [vmem:[#allocation2 + $0x20] sm:$0xff] %v1186_v16 }
  0x42   : > { %356 = vst [vmem:[#allocation2 + $0x10] sm:$0xff] %v1186_v16 }
  0x43   : > { %357 = vst [vmem:[#allocation2 + $0x38] sm:$0xff] %v1186_v16 }
  0x44   : > { %358 = vst [vmem:[#allocation2 + $0x60] sm:$0xff] %v1186_v16 }
  0x45   : > { %359 = vst [vmem:[#allocation2 + $0x70] sm:$0xff] %v1186_v16 }
  0x46   : > { %360 = vst [vmem:[#allocation2 + $0x78] sm:$0xff] %v1186_v16 }
  0x47   : > { %361 = vst [vmem:[#allocation2 + $0x28] sm:$0xff] %v1186_v16 }
  0x48 PF: > { %v1015_v17 = vld [vmem:[%s1298_s29 + $0x38] sm:$0xff]  ;;  %v1014_v18 = vld [vmem:[%s1298_s29 + $0x30] sm:$0xff]  ;;  %v1013_v19 = vld [vmem:[%s1298_s29 + $0x28] sm:$0xff]  ;;  %p964_p13 = scmp.ne.s32.totalorder %s1168_s17, 1 }
  0x49   : > { %506 = vmatpush.bf16.msra.mxu0 %v1015_v17  ;;  %1024 = vmatpush.bf16.msra.mxu1 %v1015_v17  ;;  %v1012_v20 = vld [vmem:[%s1298_s29 + $0x20] sm:$0xff]  ;;  %v1011_v21 = vld [vmem:[%s1298_s29 + $0x18] sm:$0xff]  ;;  %v1010_v22 = vld [vmem:[%s1298_s29 + $0x10] sm:$0xff] }
  0x4a   : > { %1025 = vmatpush.bf16.msra.mxu2 %v1015_v17  ;;  %1026 = vmatpush.bf16.msra.mxu3 %v1015_v17  ;;  %v1009_v23 = vld [vmem:[%s1298_s29 + $0x8] sm:$0xff]  ;;  %v1008_v24 = vld [vmem:[%s1298_s29] sm:$0xff]  ;;  %v1002_v26 = vld [vmem:[%s1305_s15 + $0x10] sm:$0xff] }
  0x4b   : > { %v1000_v25 = vld [vmem:[%s1305_s15] sm:$0xff]  ;;  %v1006_v28 = vld [vmem:[%s1305_s15 + $0x30] sm:$0xff]  ;;  %v1001_v29 = vld [vmem:[%s1305_s15 + $0x8] sm:$0xff] }
  0x4c   : > { %v1004_v27 = vld [vmem:[%s1305_s15 + $0x20] sm:$0xff]  ;;  %v1003_v30 = vld [vmem:[%s1305_s15 + $0x18] sm:$0xff]  ;;  %v1005_v31 = vld [vmem:[%s1305_s15 + $0x28] sm:$0xff] }
  0x4d   : > { %507 = vmatpush.bf16.msra.mxu0 %v1014_v18  ;;  %1027 = vmatpush.bf16.msra.mxu1 %v1014_v18  ;;  %v1007_v32 = vld [vmem:[%s1305_s15 + $0x38] sm:$0xff]  ;;  %v362_v33 = vld [vmem:[#allocation2 + $0x30] sm:$0xff]  ;;  %v370_v39 = vld [vmem:[#allocation2 + $0x40] sm:$0xff] }
  0x4e   : > { %1028 = vmatpush.bf16.msra.mxu2 %v1014_v18  ;;  %1029 = vmatpush.bf16.msra.mxu3 %v1014_v18  ;;  %v366_v34 = vld [vmem:[#allocation2 + $0x50] sm:$0xff]  ;;  %v374_v40 = vld [vmem:[#allocation2 + $0x60] sm:$0xff]  ;;  %v367_v42 = vld [vmem:[#allocation2 + $0x68] sm:$0xff] }
  0x4f   : > { %v363_v41 = vld [vmem:[#allocation2] sm:$0xff]  ;;  %v375_v52 = vld [vmem:[#allocation2 + $0x70] sm:$0xff]  ;;  %v364_v53 = vld [vmem:[#allocation2 + $0x58] sm:$0xff] }
  0x50   : > { %v371_v51 = vld [vmem:[#allocation2 + $0x20] sm:$0xff]  ;;  %v368_v54 = vld [vmem:[#allocation2 + $0x8] sm:$0xff]  ;;  %v372_v63 = vld [vmem:[#allocation2 + $0x10] sm:$0xff] }
  0x51   : > { %508 = vmatpush.bf16.msra.mxu0 %v1013_v19  ;;  %1030 = vmatpush.bf16.msra.mxu1 %v1013_v19  ;;  %v376_v0 = vld [vmem:[#allocation2 + $0x78] sm:$0xff]  ;;  %v369_v2 = vld [vmem:[#allocation2 + $0x48] sm:$0xff] }
  0x52   : > { %1031 = vmatpush.bf16.msra.mxu2 %v1013_v19  ;;  %1032 = vmatpush.bf16.msra.mxu3 %v1013_v19  ;;  %v365_v1 = vld [vmem:[#allocation2 + $0x18] sm:$0xff]  ;;  %v377_v12 = vld [vmem:[#allocation2 + $0x28] sm:$0xff] }
  0x53   : > { %v373_v11 = vld [vmem:[#allocation2 + $0x38] sm:$0xff] }
  0x55   : > { %509 = vmatpush.bf16.msra.mxu0 %v1012_v20  ;;  %1033 = vmatpush.bf16.msra.mxu1 %v1012_v20 }
  0x56   : > { %1034 = vmatpush.bf16.msra.mxu2 %v1012_v20  ;;  %1035 = vmatpush.bf16.msra.mxu3 %v1012_v20 }
  0x59   : > { %510 = vmatpush.bf16.msra.mxu0 %v1011_v21  ;;  %1036 = vmatpush.bf16.msra.mxu1 %v1011_v21 }
  0x5a   : > { %1037 = vmatpush.bf16.msra.mxu2 %v1011_v21  ;;  %1038 = vmatpush.bf16.msra.mxu3 %v1011_v21 }
  0x5d   : > { %511 = vmatpush.bf16.msra.mxu0 %v1010_v22  ;;  %1039 = vmatpush.bf16.msra.mxu1 %v1010_v22 }
  0x5e   : > { %1040 = vmatpush.bf16.msra.mxu2 %v1010_v22  ;;  %1041 = vmatpush.bf16.msra.mxu3 %v1010_v22 }
  0x61   : > { %512 = vmatpush.bf16.msra.mxu0 %v1009_v23  ;;  %1042 = vmatpush.bf16.msra.mxu1 %v1009_v23 }
  0x62   : > { %1043 = vmatpush.bf16.msra.mxu2 %v1009_v23  ;;  %1044 = vmatpush.bf16.msra.mxu3 %v1009_v23 }
  0x65   : > { %513 = vmatpush.bf16.msra.mxu0 %v1008_v24  ;;  %1045 = vmatpush.bf16.msra.mxu1 %v1008_v24 }
  0x66   : > { %1046 = vmatpush.bf16.msra.mxu2 %v1008_v24  ;;  %1047 = vmatpush.bf16.msra.mxu3 %v1008_v24 }
  0x68   : > { %514 = vmatmul.bf16.vlgmr.msra.gmra.mxu0 %v1000_v25  ;;  %524 = vmatmul.bf16.vlgmr.msra.gmra.mxu1 %v1002_v26 }
  0x69   : > { %534 = vmatmul.bf16.vlgmr.msra.gmra.mxu2 %v1004_v27  ;;  %544 = vmatmul.bf16.vlgmr.msra.gmra.mxu3 %v1006_v28 }
  0x78   : > { %519 = vmatmul.bf16.gmra.mxu0 %v1001_v29  ;;  %529 = vmatmul.bf16.gmra.mxu1 %v1003_v30 }
  0x79   : > { %539 = vmatmul.bf16.gmra.mxu2 %v1005_v31  ;;  %549 = vmatmul.bf16.gmra.mxu3 %v1007_v32 }
  0xe5   : > { %v515_v35 = vpop.f32.mrf.mxu0  ;;  %v525_v36 = vpop.f32.mrf.mxu1 }
  0xe6   : > { %v555_v37 = vadd.f32 %v515_v35, %v362_v33  ;;  %v559_v38 = vadd.f32 %v525_v36, %v366_v34 }
  0xe8   : > { %571 = vst [vmem:[#allocation2 + $0x30] sm:$0xff] %v555_v37 }
  0xe9   : > { %575 = vst [vmem:[#allocation2 + $0x50] sm:$0xff] %v559_v38 }
  0xec   : > { %v535_v43 = vpop.f32.mrf.mxu2  ;;  %v545_v44 = vpop.f32.mrf.mxu3 }
  0xed   : > { %v563_v45 = vadd.f32 %v535_v43, %v370_v39  ;;  %v567_v46 = vadd.f32 %v545_v44, %v374_v40  ;;  %v517_v47 = vpop.f32.mrf.mxu0  ;;  %v527_v48 = vpop.f32.mrf.mxu1 }
  0xee   : > { %v556_v49 = vadd.f32 %v517_v47, %v363_v41  ;;  %v560_v50 = vadd.f32 %v527_v48, %v367_v42 }
  0xef   : > { %579 = vst [vmem:[#allocation2 + $0x40] sm:$0xff] %v563_v45 }
  0xf0   : > { %583 = vst [vmem:[#allocation2 + $0x60] sm:$0xff] %v567_v46 }
  0xf1   : > { %572 = vst [vmem:[#allocation2] sm:$0xff] %v556_v49 }
  0xf2   : > { %576 = vst [vmem:[#allocation2 + $0x68] sm:$0xff] %v560_v50 }
  0xf4   : > { %v537_v55 = vpop.f32.mrf.mxu2  ;;  %v547_v56 = vpop.f32.mrf.mxu3 }
  0xf5   : > { %v564_v57 = vadd.f32 %v537_v55, %v371_v51  ;;  %v568_v58 = vadd.f32 %v547_v56, %v375_v52  ;;  %v520_v59 = vpop.f32.mrf.mxu0  ;;  %v530_v60 = vpop.f32.mrf.mxu1 }
  0xf6   : > { %v557_v61 = vadd.f32 %v520_v59, %v364_v53  ;;  %v561_v62 = vadd.f32 %v530_v60, %v368_v54 }
  0xf7   : > { %580 = vst [vmem:[#allocation2 + $0x20] sm:$0xff] %v564_v57 }
  0xf8   : > { %584 = vst [vmem:[#allocation2 + $0x70] sm:$0xff] %v568_v58 }
  0xf9   : > { %573 = vst [vmem:[#allocation2 + $0x58] sm:$0xff] %v557_v61 }
  0xfa   : > { %577 = vst [vmem:[#allocation2 + $0x8] sm:$0xff] %v561_v62 }
  0xfc   : > { %v540_v3 = vpop.f32.mrf.mxu2  ;;  %v550_v4 = vpop.f32.mrf.mxu3 }
  0xfd   : > { %v565_v5 = vadd.f32 %v540_v3, %v372_v63  ;;  %v569_v6 = vadd.f32 %v550_v4, %v376_v0  ;;  %v522_v7 = vpop.f32.mrf.mxu0  ;;  %v532_v8 = vpop.f32.mrf.mxu1 }
  0xfe   : > { %v558_v9 = vadd.f32 %v522_v7, %v365_v1  ;;  %v562_v10 = vadd.f32 %v532_v8, %v369_v2 }
  0xff   : > { %581 = vst [vmem:[#allocation2 + $0x10] sm:$0xff] %v565_v5 }
 0x100   : > { %585 = vst [vmem:[#allocation2 + $0x78] sm:$0xff] %v569_v6 }
 0x101   : > { %574 = vst [vmem:[#allocation2 + $0x18] sm:$0xff] %v558_v9 }
 0x102   : > { %578 = vst [vmem:[#allocation2 + $0x48] sm:$0xff] %v562_v10 }
 0x104   : > { %v542_v13 = vpop.f32.mrf.mxu2  ;;  %v552_v14 = vpop.f32.mrf.mxu3  ;;  %590 = sbr.rel (%p964_p13) target bundleno = 458 (0x1ca), region = 85 }
 0x105   : > { %v566_v15 = vadd.f32 %v542_v13, %v373_v11  ;;  %v570_v16 = vadd.f32 %v552_v14, %v377_v12 }
 0x107   : > { %582 = vst [vmem:[#allocation2 + $0x38] sm:$0xff] %v566_v15 }
 0x108   : > { %586 = vst [vmem:[#allocation2 + $0x28] sm:$0xff] %v570_v16 }
 0x109   : > { %v1023_v17 = vld [vmem:[%s1426_s3 + $0x38] sm:$0xff]  ;;  %v1022_v18 = vld [vmem:[%s1426_s3 + $0x30] sm:$0xff]  ;;  %v1021_v19 = vld [vmem:[%s1426_s3 + $0x28] sm:$0xff]  ;;  %vm780_vm0 = vcmask 519168  }
 0x10a   : > { %715 = vmatpush.bf16.msra.mxu0 %v1023_v17  ;;  %1048 = vmatpush.bf16.msra.mxu1 %v1023_v17  ;;  %v1020_v20 = vld [vmem:[%s1426_s3 + $0x20] sm:$0xff]  ;;  %v1019_v21 = vld [vmem:[%s1426_s3 + $0x18] sm:$0xff]  ;;  %v1018_v23 = vld [vmem:[%s1426_s3 + $0x10] sm:$0xff] }
 0x10b   : > { %1049 = vmatpush.bf16.msra.mxu2 %v1023_v17  ;;  %1050 = vmatpush.bf16.msra.mxu3 %v1023_v17  ;;  %v1343_v22 = vld [vmem:[%s1425_s2] ss:$0 sm:$0xff]  ;;  %v591_v24 = vld [vmem:[#allocation2 + $0x30] sm:$0xff]  ;;  %v596_v27 = vld [vmem:[#allocation2 + $0x68] sm:$0xff] }
 0x10c   : > { %v592_v25 = vld [vmem:[#allocation2] sm:$0xff]  ;;  %v595_v26 = vld [vmem:[#allocation2 + $0x50] sm:$0xff]  ;;  %v611_v32 = vadd.f32 %v1343_v22, %v591_v24  ;;  %v616_v35 = vadd.f32 %v1343_v22, %v596_v27  ;;  %v1017_v37 = vld [vmem:[%s1426_s3 + $0x8] sm:$0xff] }
 0x10d   : > { %v599_v28 = vld [vmem:[#allocation2 + $0x40] sm:$0xff]  ;;  %v604_v31 = vld [vmem:[#allocation2 + $0x70] sm:$0xff]  ;;  %v612_v33 = vadd.f32 %v1343_v22, %v592_v25  ;;  %v615_v34 = vadd.f32 %v1343_v22, %v595_v26  ;;  %v593_v54 = vld [vmem:[#allocation2 + $0x58] sm:$0xff] }
 0x10e   : > { %716 = vmatpush.bf16.msra.mxu0 %v1022_v18  ;;  %1051 = vmatpush.bf16.msra.mxu1 %v1022_v18  ;;  %v600_v29 = vld [vmem:[#allocation2 + $0x20] sm:$0xff]  ;;  %v619_v36 = vadd.f32 %v1343_v22, %v599_v28  ;;  %v624_v40 = vadd.f32 %v1343_v22, %v604_v31  ;;  %v627_v41 = vmax.f32 %v611_v32, 0.0  ;;  %v632_v44 = vmax.f32 %v616_v35, 0.0  ;;  %v594_v55 = vld [vmem:[#allocation2 + $0x18] sm:$0xff]  ;;  %v597_v56 = vld [vmem:[#allocation2 + $0x8] sm:$0xff] }
 0x10f   : > { %1052 = vmatpush.bf16.msra.mxu2 %v1022_v18  ;;  %1053 = vmatpush.bf16.msra.mxu3 %v1022_v18  ;;  %v603_v30 = vld [vmem:[#allocation2 + $0x60] sm:$0xff]  ;;  %v620_v38 = vadd.f32 %v1343_v22, %v600_v29  ;;  %v628_v42 = vmax.f32 %v612_v33, 0.0  ;;  %v631_v43 = vmax.f32 %v615_v34, 0.0  ;;  %v598_v57 = vld [vmem:[#allocation2 + $0x48] sm:$0xff]  ;;  %v601_v58 = vld [vmem:[#allocation2 + $0x10] sm:$0xff]  ;;  %v613_v62 = vadd.f32 %v1343_v22, %v593_v54 }
 0x110   : > { %v623_v39 = vadd.f32 %v1343_v22, %v603_v30  ;;  %v1016_v45 = vld [vmem:[%s1426_s3] sm:$0xff]  ;;  %v635_v46 = vmax.f32 %v619_v36, 0.0  ;;  %v640_v49 = vmax.f32 %v624_v40, 0.0  ;;  %v602_v59 = vld [vmem:[#allocation2 + $0x38] sm:$0xff]  ;;  %v606_v61 = vld [vmem:[#allocation2 + $0x28] sm:$0xff]  ;;  %v614_v63 = vadd.f32 %v1343_v22, %v594_v55 }
 0x111   : > { %v636_v47 = vmax.f32 %v620_v38, 0.0  ;;  %v643_v50 = vpack.c.bf16 %v628_v42, %v627_v41  ;;  %v645_v51 = vpack.c.bf16 %v632_v44, %v631_v43  ;;  %v605_v60 = vld [vmem:[#allocation2 + $0x78] sm:$0xff]  ;;  %v617_v0 = vadd.f32 %v1343_v22, %v597_v56 }
 0x112   : > { %717 = vmatpush.bf16.msra.mxu0 %v1021_v19  ;;  %1054 = vmatpush.bf16.msra.mxu1 %v1021_v19  ;;  %v639_v48 = vmax.f32 %v623_v39, 0.0  ;;  %v618_v1 = vadd.f32 %v1343_v22, %v598_v57  ;;  %v621_v2 = vadd.f32 %v1343_v22, %v601_v58  ;;  %v622_v3 = vadd.f32 %v1343_v22, %v602_v59 }
 0x113   : > { %1055 = vmatpush.bf16.msra.mxu2 %v1021_v19  ;;  %1056 = vmatpush.bf16.msra.mxu3 %v1021_v19  ;;  %v647_v52 = vpack.c.bf16 %v636_v47, %v635_v46  ;;  %v625_v4 = vadd.f32 %v1343_v22, %v605_v60  ;;  %v626_v5 = vadd.f32 %v1343_v22, %v606_v61  ;;  %v629_v6 = vmax.f32 %v613_v62, 0.0 }
 0x114   : > { %v649_v53 = vpack.c.bf16 %v640_v49, %v639_v48  ;;  %v630_v7 = vmax.f32 %v614_v63, 0.0  ;;  %v633_v8 = vmax.f32 %v617_v0, 0.0  ;;  %v634_v9 = vmax.f32 %v618_v1, 0.0 }
 0x115   : > { %v637_v10 = vmax.f32 %v621_v2, 0.0  ;;  %v638_v11 = vmax.f32 %v622_v3, 0.0  ;;  %v641_v12 = vmax.f32 %v625_v4, 0.0  ;;  %v642_v13 = vmax.f32 %v626_v5, 0.0 }
 0x116   : > { %718 = vmatpush.bf16.msra.mxu0 %v1020_v20  ;;  %1057 = vmatpush.bf16.msra.mxu1 %v1020_v20  ;;  %v644_v14 = vpack.c.bf16 %v630_v7, %v629_v6  ;;  %v646_v15 = vpack.c.bf16 %v634_v9, %v633_v8 }
 0x117   : > { %1058 = vmatpush.bf16.msra.mxu2 %v1020_v20  ;;  %1059 = vmatpush.bf16.msra.mxu3 %v1020_v20  ;;  %v648_v16 = vpack.c.bf16 %v638_v11, %v637_v10  ;;  %v650_v17 = vpack.c.bf16 %v642_v13, %v641_v12 }
 0x11a   : > { %719 = vmatpush.bf16.msra.mxu0 %v1019_v21  ;;  %1060 = vmatpush.bf16.msra.mxu1 %v1019_v21 }
 0x11b   : > { %1061 = vmatpush.bf16.msra.mxu2 %v1019_v21  ;;  %1062 = vmatpush.bf16.msra.mxu3 %v1019_v21 }
 0x11e   : > { %720 = vmatpush.bf16.msra.mxu0 %v1018_v23  ;;  %1063 = vmatpush.bf16.msra.mxu1 %v1018_v23 }
 0x11f   : > { %1064 = vmatpush.bf16.msra.mxu2 %v1018_v23  ;;  %1065 = vmatpush.bf16.msra.mxu3 %v1018_v23 }
 0x122   : > { %721 = vmatpush.bf16.msra.mxu0 %v1017_v37  ;;  %1066 = vmatpush.bf16.msra.mxu1 %v1017_v37 }
 0x123   : > { %1067 = vmatpush.bf16.msra.mxu2 %v1017_v37  ;;  %1068 = vmatpush.bf16.msra.mxu3 %v1017_v37 }
 0x126   : > { %722 = vmatpush.bf16.msra.mxu0 %v1016_v45  ;;  %1069 = vmatpush.bf16.msra.mxu1 %v1016_v45 }
 0x127   : > { %1070 = vmatpush.bf16.msra.mxu2 %v1016_v45  ;;  %1071 = vmatpush.bf16.msra.mxu3 %v1016_v45 }
 0x129   : > { %723 = vmatmul.bf16.vlgmr.msra.gmra.mxu0 %v643_v50  ;;  %733 = vmatmul.bf16.vlgmr.msra.gmra.mxu1 %v645_v51 }
 0x12a   : > { %743 = vmatmul.bf16.vlgmr.msra.gmra.mxu2 %v647_v52  ;;  %753 = vmatmul.bf16.vlgmr.msra.gmra.mxu3 %v649_v53 }
 0x139   : > { %728 = vmatmul.bf16.gmra.mxu0 %v644_v14  ;;  %738 = vmatmul.bf16.gmra.mxu1 %v646_v15 }
 0x13a   : > { %748 = vmatmul.bf16.gmra.mxu2 %v648_v16  ;;  %758 = vmatmul.bf16.gmra.mxu3 %v650_v17 }
 0x1a6   : > { %v724_v18 = vpop.f32.mrf.mxu0  ;;  %v734_v19 = vpop.f32.mrf.mxu1 }
 0x1a7   : > { %v764_v20 = vpack.c.bf16 %v724_v18, %v724_v18  ;;  %v768_v21 = vpack.c.bf16 %v734_v19, %v734_v19 }
 0x1a9   : > { %781 = vst.msk [vmem:[%s1303_s7] sm:$0xf] %vm780_vm0, %v764_v20 }
 0x1aa   : > { %785 = vst.msk [vmem:[%s1303_s7 + $0x10] sm:$0xf] %vm780_vm0, %v768_v21 }
 0x1ad   : > { %v744_v22 = vpop.f32.mrf.mxu2  ;;  %v754_v23 = vpop.f32.mrf.mxu3 }
 0x1ae   : > { %v772_v24 = vpack.c.bf16 %v744_v22, %v744_v22  ;;  %v776_v25 = vpack.c.bf16 %v754_v23, %v754_v23  ;;  %v726_v26 = vpop.f32.mrf.mxu0  ;;  %v736_v27 = vpop.f32.mrf.mxu1 }
 0x1af   : > { %v765_v28 = vpack.c.bf16 %v726_v26, %v726_v26  ;;  %v769_v29 = vpack.c.bf16 %v736_v27, %v736_v27 }
 0x1b0   : > { %789 = vst.msk [vmem:[%s1303_s7 + $0x20] sm:$0xf] %vm780_vm0, %v772_v24 }
 0x1b1   : > { %793 = vst.msk [vmem:[%s1303_s7 + $0x30] sm:$0xf] %vm780_vm0, %v776_v25 }
 0x1b2   : > { %782 = vst.msk [vmem:[%s1303_s7 + $0x4] sm:$0xf] %vm780_vm0, %v765_v28 }
 0x1b3   : > { %786 = vst.msk [vmem:[%s1303_s7 + $0x14] sm:$0xf] %vm780_vm0, %v769_v29 }
 0x1b5   : > { %v746_v30 = vpop.f32.mrf.mxu2  ;;  %v756_v31 = vpop.f32.mrf.mxu3 }
 0x1b6   : > { %v773_v32 = vpack.c.bf16 %v746_v30, %v746_v30  ;;  %v777_v33 = vpack.c.bf16 %v756_v31, %v756_v31  ;;  %v729_v34 = vpop.f32.mrf.mxu0  ;;  %v739_v35 = vpop.f32.mrf.mxu1 }
 0x1b7   : > { %v766_v36 = vpack.c.bf16 %v729_v34, %v729_v34  ;;  %v770_v37 = vpack.c.bf16 %v739_v35, %v739_v35 }
 0x1b8   : > { %790 = vst.msk [vmem:[%s1303_s7 + $0x24] sm:$0xf] %vm780_vm0, %v773_v32 }
 0x1b9   : > { %794 = vst.msk [vmem:[%s1303_s7 + $0x34] sm:$0xf] %vm780_vm0, %v777_v33 }
 0x1ba   : > { %783 = vst.msk [vmem:[%s1303_s7 + $0x8] sm:$0xf] %vm780_vm0, %v766_v36 }
 0x1bb   : > { %787 = vst.msk [vmem:[%s1303_s7 + $0x18] sm:$0xf] %vm780_vm0, %v770_v37 }
 0x1bd   : > { %v749_v38 = vpop.f32.mrf.mxu2  ;;  %v759_v39 = vpop.f32.mrf.mxu3 }
 0x1be   : > { %v774_v40 = vpack.c.bf16 %v749_v38, %v749_v38  ;;  %v778_v41 = vpack.c.bf16 %v759_v39, %v759_v39  ;;  %v731_v42 = vpop.f32.mrf.mxu0  ;;  %v741_v43 = vpop.f32.mrf.mxu1 }
 0x1bf   : > { %v767_v44 = vpack.c.bf16 %v731_v42, %v731_v42  ;;  %v771_v45 = vpack.c.bf16 %v741_v43, %v741_v43 }
 0x1c0   : > { %791 = vst.msk [vmem:[%s1303_s7 + $0x28] sm:$0xf] %vm780_vm0, %v774_v40 }
 0x1c1   : > { %795 = vst.msk [vmem:[%s1303_s7 + $0x38] sm:$0xf] %vm780_vm0, %v778_v41 }
 0x1c2   : > { %784 = vst.msk [vmem:[%s1303_s7 + $0xc] sm:$0xf] %vm780_vm0, %v767_v44 }
 0x1c3   : > { %788 = vst.msk [vmem:[%s1303_s7 + $0x1c] sm:$0xf] %vm780_vm0, %v771_v45 }
 0x1c5   : > { %v751_v46 = vpop.f32.mrf.mxu2  ;;  %v761_v47 = vpop.f32.mrf.mxu3 }
 0x1c6   : > { %v775_v48 = vpack.c.bf16 %v751_v46, %v751_v46  ;;  %v779_v49 = vpack.c.bf16 %v761_v47, %v761_v47 }
 0x1c8   : > { %792 = vst.msk [vmem:[%s1303_s7 + $0x2c] sm:$0xf] %vm780_vm0, %v775_v48 }
 0x1c9   : > { %796 = vst.msk [vmem:[%s1303_s7 + $0x3c] sm:$0xf] %vm780_vm0, %v779_v49 }
 0x1ca PF: > { %s14_s21 = sadd.s32 1, %s1184_s21   ;;  %s1428_s15 = smov %s1164_s16 }
 0x1cb   : > { %p11_p0 = scmp.ge.s32.totalorder %s14_s21, 6   ;;  %s1429_s16 = smov %s1263_s28 }
 0x1cc   : > { %s1430_s17 = smov %s1176_s19  ;;  %s1431_s18 = smov %s1180_s20 }
 0x1cd   : > { %s1432_s19 = smov %s1435_s22  ;;  %s1433_s20 = smov %s1439_s23 }
 0x1ce   :  { %13 = sbr.rel (!%p11_p0) target bundleno = 4 (0x4), region = 123 }

// kernel: gnn_forward.9
= control target key start
LH: loop header
LB: loop body
LE: loop exit
PB: predicated region body
PF: predicated region fallthrough
CT: control target
= control target key end

     0   :  { %s785_s21 = smov 0   ;;  %s787_s22 = smov 0   ;;  %s885_s0 = inlined_call_operand.vmem [shape: bf16[24,256], index: 0, kind: input, shape index: {}]   ;;  %s886_s1 = inlined_call_operand.vmem [shape: bf16[256,64], index: 1, kind: input, shape index: {}]   ;;  %s887_s2 = inlined_call_operand.vmem [shape: bf16[64,32], index: 2, kind: input, shape index: {}]   ;;  %s888_s3 = inlined_call_operand.vmem [shape: f32[1,32], index: 3, kind: input, shape index: {}]   ;;  %s889_s4 = inlined_call_operand.vmem [shape: bf16[32,128], index: 4, kind: input, shape index: {}]   ;;  %s890_s5 = inlined_call_operand.vmem [shape: f32[1,128], index: 5, kind: input, shape index: {}]   ;;  %s891_s6 = inlined_call_operand.vmem [shape: f32[24,128], index: 6, kind: output, shape index: {}]  }
   0x1   :  { %s789_s23 = smov 0  }
   0x2 LB: > { %s798_s24 = sadd.s32 4294967295, %s747_s23   ;;  %s800_s25 = sadd.s32 1, %s747_s23   ;;  %s747_s23 = sphi %s789_s23, %s894_s23   ;;  %s743_s22 = sphi %s787_s22, %s893_s22   ;;  %s739_s21 = sphi %s785_s21, %s892_s21  }
   0x3   : > { %s20_s26 = ssub.s32 %s747_s23, %s800_s25  ;;  %s23_s27 = sadd.s32 1, %s743_s22 }
   0x4   : > { %p21_p0 = scmp.eq.s32.totalorder %s20_s26, 0  ;;  %p30_p1 = scmp.ne.s32.totalorder %s743_s22, %s739_s21 }
   0x5   : > { %p31_p2 = scmp.eq.s32.totalorder %s747_s23, 0  ;;  %p594_p4 = scmp.ge.s32.totalorder %s747_s23, 2 }
   0x6   : > { %s807_s28 = scalar_select %p21_p0, %s743_s22, %s23_s27  }
   0x7   : > { %p32_p3 = por %p31_p2, %p30_p1  ;;  %199 = sbr.rel (%p594_p4) target bundleno = 20 (0x14), region = 32 }
   0xc   : > { %202 = sbr.rel (!%p32_p3) target bundleno = 20 (0x14), region = 36  ;;  %s204_s29 = sand.u32 (%p32_p3), 1, %s743_s22  }
   0xd   : > { %s595_s30 = sshll.u32 (%p32_p3), %s747_s23, 2  ;;  %s696_s7 = smul.u32 (%p32_p3), 12, %s204_s29 }
   0xe   : > { %s208_s10 = scalar_lea.vmem (%p32_p3), %s885_s0, %s595_s30 }
   0xf   : > { %v225_v0 = vld [vmem:[%s208_s10] sm:$0xf] (%p32_p3)  ;;  %v227_v1 = vld [vmem:[%s208_s10 + $0x8] sm:$0xf] (%p32_p3)  ;;  %v229_v2 = vld [vmem:[%s208_s10 + $0x10] sm:$0xf] (%p32_p3) }
  0x10   : > { %s206_s11 = scalar_lea.vmem (%p32_p3), [#allocation3], %s696_s7 }
  0x11   : > { %226 = vst [vmem:[%s206_s11] sm:$0xf] %v225_v0 }
  0x12   : > { %228 = vst [vmem:[%s206_s11 + $0x4] sm:$0xf] %v227_v1 }
  0x13   : > { %230 = vst [vmem:[%s206_s11 + $0x8] sm:$0xf] %v229_v2 }
  0x14 PF: > { %p596_p5 = scmp.ge.s32.totalorder %s747_s23, 1  ;;  %p268_p6 = scmp.lt.s32.totalorder %s747_s23, 3 }
  0x16   : > { %p269_p7 = pnand %p596_p5, %p268_p6 }
  0x17   : > { %s275_s12 = sand.u32 (!%p269_p7), 1, %s739_s21   ;;  %s597_s13 = sshll.u32 (!%p269_p7), %s798_s24, 4 }
  0x18   : > { %272 = sbr.rel (%p269_p7) target bundleno = 501 (0x1f5), region = 81  ;;  %p305_p8 = scmp.lt.s32.totalorder (!%p269_p7), %s597_s13, 31 }
  0x19   : > { %s815_s14 = smul.u32 (!%p269_p7), 12, %s275_s12  ;;  %p599_p9 = scmp.ne.s32.totalorder (!%p269_p7), %s798_s24, 0 }
  0x1b   : > { %s277_s19 = scalar_lea.vmem (!%p269_p7), [#allocation3], %s815_s14 }
  0x1d   : > { %s896_s13 = smov (!%p305_p8, %s597_s13), 31  ;;  %314 = sbr.rel (%p599_p9) target bundleno = 38 (0x26), region = 89 }
  0x1e   : > { %s598_s15 = sshll.u32 %s896_s13, 2 }
  0x1f   : > { %s820_s18 = scalar_lea.vmem %s886_s1, %s598_s15 }
  0x22   : > { %vm315_vm0 = vcmask 523264   ;;  %v749_v3 = vmov 0.0  }
  0x23   : > { %316 = vst.msk [vmem:[#allocation2] sm:$0xff] %vm315_vm0, %v749_v3 }
  0x24   : > { %317 = vst.msk [vmem:[#allocation2 + $0x8] sm:$0xff] %vm315_vm0, %v749_v3 }
  0x25   : > { %318 = vst.msk [vmem:[#allocation2 + $0x10] sm:$0xff] %vm315_vm0, %v749_v3 }
  0x26 PF: > { %v675_v4 = vld [vmem:[%s820_s18 + $0x38] sm:$0xff]  ;;  %v674_v5 = vld [vmem:[%s820_s18 + $0x30] sm:$0xff]  ;;  %v673_v6 = vld [vmem:[%s820_s18 + $0x28] sm:$0xff]  ;;  %vm420_vm1 = vcmask 523264   ;;  %p636_p10 = scmp.ne.s32.totalorder %s798_s24, 1 }
  0x27   : > { %399 = vmatpush.bf16.msra.mxu0 %v675_v4  ;;  %682 = vmatpush.bf16.msra.mxu1 %v675_v4  ;;  %v672_v7 = vld [vmem:[%s820_s18 + $0x20] sm:$0xff]  ;;  %v671_v8 = vld [vmem:[%s820_s18 + $0x18] sm:$0xff]  ;;  %v670_v9 = vld [vmem:[%s820_s18 + $0x10] sm:$0xff] }
  0x28   : > { %v669_v10 = vld [vmem:[%s820_s18 + $0x8] sm:$0xff]  ;;  %v668_v13 = vld [vmem:[%s820_s18] sm:$0xff] }
  0x29   : > { %v324_v11 = vld [vmem:[%s277_s19 + $0x8] sm:$0xf]  ;;  %v667_v14 = vld [vmem:[%s277_s19] sm:$0xff] }
  0x2a   : > { %v346_v12 = vunpack.c.l.b16 %v324_v11  ;;  %v319_v16 = vld [vmem:[#allocation2] sm:$0xff] }
  0x2b   : > { %400 = vmatpush.bf16.msra.mxu0 %v674_v5  ;;  %683 = vmatpush.bf16.msra.mxu1 %v674_v5  ;;  %v320_v22 = vld [vmem:[#allocation2 + $0x8] sm:$0xff] }
  0x2c   : > { %v348_v15 = vpack.c.b16 %v346_v12, %v346_v12  ;;  %v321_v17 = vld [vmem:[#allocation2 + $0x10] sm:$0xff] }
  0x2f   : > { %401 = vmatpush.bf16.msra.mxu0 %v673_v6  ;;  %684 = vmatpush.bf16.msra.mxu1 %v673_v6 }
  0x33   : > { %402 = vmatpush.bf16.msra.mxu0 %v672_v7  ;;  %685 = vmatpush.bf16.msra.mxu1 %v672_v7 }
  0x37   : > { %403 = vmatpush.bf16.msra.mxu0 %v671_v8  ;;  %686 = vmatpush.bf16.msra.mxu1 %v671_v8 }
  0x3b   : > { %404 = vmatpush.bf16.msra.mxu0 %v670_v9  ;;  %687 = vmatpush.bf16.msra.mxu1 %v670_v9 }
  0x3f   : > { %405 = vmatpush.bf16.msra.mxu0 %v669_v10  ;;  %688 = vmatpush.bf16.msra.mxu1 %v669_v10 }
  0x43   : > { %406 = vmatpush.bf16.msra.mxu0 %v668_v13  ;;  %689 = vmatpush.bf16.msra.mxu1 %v668_v13 }
  0x46   : > { %407 = vmatmul.bf16.vlgmr.msra.gmra.mxu0 %v667_v14  ;;  %412 = vmatmul.bf16.vlgmr.msra.gmra.mxu1 %v348_v15 }
  0xc3   : > { %v408_v18 = vpop.f32.mrf.mxu0  ;;  %v413_v19 = vpop.f32.mrf.mxu1 }
  0xc4   : > { %v417_v20 = vadd.f32 %v408_v18, %v319_v16  ;;  %v419_v21 = vadd.f32 %v413_v19, %v321_v17 }
  0xc6   : > { %421 = vst.msk [vmem:[#allocation2] sm:$0xff] %vm420_vm1, %v417_v20 }
  0xc7   : > { %423 = vst.msk [vmem:[#allocation2 + $0x10] sm:$0xff] %vm420_vm1, %v419_v21 }
  0xca   : > { %427 = sbr.rel (%p636_p10) target bundleno = 501 (0x1f5), region = 93 }
  0xcb   : > { %v410_v23 = vpop.f32.mrf.mxu0  ;;  %v415_v24 = vpop.f32.mrf.mxu1 }
  0xcc   : > { %v418_v25 = vadd.f32 %v410_v23, %v320_v22 }
  0xce   : > { %422 = vst.msk [vmem:[#allocation2 + $0x8] sm:$0xff] %vm420_vm1, %v418_v25 }
  0xcf   : > { %v679_v26 = vld [vmem:[%s887_s2 + $0x18] sm:$0xff]  ;;  %v678_v27 = vld [vmem:[%s887_s2 + $0x10] sm:$0xff]  ;;  %v677_v28 = vld [vmem:[%s887_s2 + $0x8] sm:$0xff]  ;;  %vm518_vm2 = vcmask 261120  }
  0xd0   : > { %479 = vmatpush.bf16.msra.mxu0 %v679_v26  ;;  %690 = vmatpush.bf16.msra.mxu2 %v679_v26  ;;  %v676_v29 = vld [vmem:[%s887_s2] sm:$0xff]  ;;  %v430_v32 = vld [vmem:[#allocation2 + $0x10] sm:$0xff]  ;;  %v681_v35 = vld [vmem:[%s889_s4 + $0x8] sm:$0xff] }
  0xd1   : > { %v428_v30 = vld [vmem:[#allocation2] sm:$0xff]  ;;  %v432_v34 = vpack.c.bf16 %v430_v32, %v430_v32  ;;  %694 = vmatpush.bf16.msra.mxu3 %v681_v35  ;;  %531 = vmatpush.bf16.msra.mxu1 %v681_v35 }
  0xd2   : > { %v680_v36 = vld [vmem:[%s889_s4] sm:$0xff] }
  0xd3   : > { %v723_v38 = vld [vmem:[%s888_s3] ss:$0 sm:$0xff] }
  0xd4   : > { %480 = vmatpush.bf16.msra.mxu0 %v678_v27  ;;  %691 = vmatpush.bf16.msra.mxu2 %v678_v27  ;;  %v724_v50 = vld [vmem:[%s890_s5] ss:$0 sm:$0xff] }
  0xd5   : > { %v429_v31 = vld [vmem:[#allocation2 + $0x8] sm:$0xff]  ;;  %695 = vmatpush.bf16.msra.mxu3 %v680_v36  ;;  %532 = vmatpush.bf16.msra.mxu1 %v680_v36 }
  0xd6   : > { %v431_v33 = vpack.c.bf16 %v429_v31, %v428_v30 }
  0xd8   : > { %481 = vmatpush.bf16.msra.mxu0 %v677_v28  ;;  %692 = vmatpush.bf16.msra.mxu2 %v677_v28 }
  0xdc   : > { %482 = vmatpush.bf16.msra.mxu0 %v676_v29  ;;  %693 = vmatpush.bf16.msra.mxu2 %v676_v29 }
  0xdf   : > { %653 = vmatmul.msk.bf16.vlgmr.msra.gmra.mxu0 %vm420_vm1, %v431_v33  ;;  %654 = vmatmul.msk.bf16.vlgmr.msra.gmra.mxu2 %vm420_vm1, %v432_v34 }
 0x15c   : > { %v484_v37 = vpop.f32.mrf.mxu0 }
 0x15d   : > { %v485_v40 = vadd.f32 %v723_v38, %v484_v37 }
 0x15f   : > { %v493_v45 = vmax.f32 %v485_v40, 0.0 }
 0x162   : > { %v489_v39 = vpop.f32.mrf.mxu2 }
 0x163   : > { %v490_v41 = vadd.f32 %v723_v38, %v489_v39 }
 0x164   : > { %v486_v42 = vpop.f32.mrf.mxu0 }
 0x165   : > { %v495_v43 = vmax.f32 %v490_v41, 0.0  ;;  %v487_v44 = vadd.f32 %v723_v38, %v486_v42 }
 0x167   : > { %v497_v46 = vpack.c.bf16 %v495_v43, %v495_v43  ;;  %v494_v47 = vmax.f32 %v487_v44, 0.0 }
 0x169   : > { %v496_v48 = vpack.c.bf16 %v494_v47, %v493_v45  ;;  %664 = vmatmul.msk.bf16.vlgmr.msra.gmra.mxu3 %vm518_vm2, %v497_v46 }
 0x16a   : > { %v491_v49 = vpop.f32.mrf.mxu2 }
 0x16b   : > { %663 = vmatmul.msk.bf16.vlgmr.msra.gmra.mxu1 %vm518_vm2, %v496_v48 }
 0x1e8   : > { %v534_v51 = vpop.f32.mrf.mxu1 }
 0x1e9   : > { %v535_v52 = vadd.f32 %v724_v50, %v534_v51 }
 0x1eb   : > { %543 = vst [vmem:[%s891_s6] sm:$0xff] %v535_v52 }
 0x1ec   : > { %v539_v53 = vpop.f32.mrf.mxu3 }
 0x1ed   : > { %v540_v54 = vadd.f32 %v724_v50, %v539_v53 }
 0x1ef   : > { %545 = vst [vmem:[%s891_s6 + $0x10] sm:$0xff] %v540_v54 }
 0x1f0   : > { %v536_v55 = vpop.f32.mrf.mxu1 }
 0x1f1   : > { %v537_v56 = vadd.f32 %v724_v50, %v536_v55 }
 0x1f3   : > { %544 = vst [vmem:[%s891_s6 + $0x8] sm:$0xff] %v537_v56 }
 0x1f4   : > { %v541_v57 = vpop.f32.mrf.mxu3 }
 0x1f5 PF: > { %p13_p11 = scmp.ge.s32.totalorder %s800_s25, 4   ;;  %s892_s21 = smov %s743_s22 }
 0x1f6   : > { %s893_s22 = smov %s807_s28  ;;  %s894_s23 = smov %s800_s25 }
 0x1f7   :  { %15 = sbr.rel (!%p13_p11) target bundleno = 2 (0x2), region = 127 }

</bundles_post_ra>
